<compile_context>
chip_gen: v5e
topology: v5e:2x2
jax: 0.10.0
libtpu: 0.0.40
codegen_flags: <defaults>
</compile_context>

<pallas_src>
import functools

import jax
import jax.numpy as jnp
from jax.experimental import pallas as pl
from jax.experimental.pallas import tpu as pltpu

LN_EPS = 1e-5        # PyTorch nn.LayerNorm default
_MASK_NEG = -1e30    # large finite additive bias (avoids -inf after row-max subtraction)


# ----------------------------------------------------------------------------
# Fused SelfAttention kernel: one grid step == `batch_block` batch elements,
# all heads. LN + fused QKV + per-head attention + output projection.
# ----------------------------------------------------------------------------
def _self_attention_kernel(
    x_ref,      # (Bb, N, D)  input block (f32)
    g_ref,      # (1, D)      LayerNorm gamma (f32)
    b_ref,      # (1, D)      LayerNorm beta  (f32)
    wqkv_ref,   # (D, 3D)     [wq*dp_scale | wk | wv]   (bf16)
    wo_ref,     # (D, D)      output projection weight  (bf16)
    bo_ref,     # (1, D)      output projection bias    (f32)
    m_ref,      # (Bb, 1, N)  key padding mask (1.0 => padding token)
    o_ref,      # (Bb, N, D)  output block
    *,
    num_heads,
):
    Bb, N, D = x_ref.shape
    H = num_heads
    c = D // H

    # ---- LayerNorm (f32) ----------------------------------------------------
    x = x_ref[...].reshape(Bb * N, D).astype(jnp.float32)
    mu = jnp.mean(x, axis=-1, keepdims=True)
    xc = x - mu
    var = jnp.mean(xc * xc, axis=-1, keepdims=True)
    xn = xc * jax.lax.rsqrt(var + LN_EPS)
    xn = xn * g_ref[...] + b_ref[...]                                # (Bb*N, D)

    # ---- Fused QKV projection: bf16 MXU path, f32 accumulation --------------
    qkv = jnp.dot(xn.astype(jnp.bfloat16), wqkv_ref[...],
                  preferred_element_type=jnp.float32)                # (Bb*N, 3D) f32
    qkv_bf = qkv.astype(jnp.bfloat16)                                # matmul operand copy

    wo = wo_ref[...]                                                 # (D, D) bf16
    bo = bo_ref[...].astype(jnp.float32)                             # (1, D)

    for bi in range(Bb):                                             # static unroll
        r0 = bi * N
        q = qkv_bf[r0:r0 + N, :D]                                    # (N, D) bf16 (scale pre-folded)
        k = qkv_bf[r0:r0 + N, D:2 * D]
        v = qkv_bf[r0:r0 + N, 2 * D:]

        # Additive key-padding bias: built and broadcast ONCE, reused per head.
        bias = jnp.broadcast_to(m_ref[bi].astype(jnp.float32) * _MASK_NEG, (N, N))

        acc = jnp.zeros((N, D), jnp.float32)
        for h in range(H):                                           # static unroll over heads
            lo = h * c
            qh = q[:, lo:lo + c]                                     # (N, c) bf16
            kh = k[:, lo:lo + c]
            vh = v[:, lo:lo + c]

            # s = qh @ kh^T  (contract last dims; bf16 MXU, f32 accumulate)
            s = jax.lax.dot_general(qh, kh, (((1,), (1,)), ((), ())),
                                    preferred_element_type=jnp.float32)  # (N, N) f32
            s = s + bias                                             # key-padding mask
            s = s - jnp.max(s, axis=-1, keepdims=True)
            p = jnp.exp(s)                                           # (N, N) f32, in (0, 1]
            inv = 1.0 / jnp.sum(p, axis=-1, keepdims=True)           # exact (N, 1) division

            # Unnormalized p @ v, normalize the (N, c) result (cheaper than (N, N)).
            oh = jnp.dot(p.astype(jnp.bfloat16), vh,
                         preferred_element_type=jnp.float32) * inv   # (N, c) f32

            # Output projection accumulated per head: no lane concat / relayout.
            acc = acc + jnp.dot(oh.astype(jnp.bfloat16), wo[lo:lo + c, :],
                                preferred_element_type=jnp.float32)  # (N, D) f32

        # Single lane-dense store per batch element (D should be a multiple of
        # 128 at production sizes for unmasked vst).
        o_ref[bi] = (acc + bo).astype(o_ref.dtype)


# ----------------------------------------------------------------------------
# Wrapper: BlockSpecs, VMEM budgeting, single-buffered weights with fallback.
# ----------------------------------------------------------------------------
def _vmem_limit_bytes(Bb, N, D):
    f32, bf16 = 4, 2
    weights = (3 * D * D + D * D) * bf16 + 3 * D * f32               # wqkv, wo, gamma/beta/bo
    io = 2 * (2 * Bb * N * D * f32) + 2 * (Bb * N * f32)             # double-buffered x/out + mask
    interm = (Bb * N * 3 * D) * (f32 + bf16)                         # qkv f32 + bf16 copy
    interm += 2 * N * N * f32 + Bb * N * D * f32                     # scores/bias + acc
    est = weights + io + interm
    return int(min(64 * 1024 * 1024, max(32 * 1024 * 1024, 2 * est)))


def _call(args, B, N, D, H, Bb, out_dtype, single_buffer_weights):
    def const_spec(shape):
        # Grid-invariant operand; single-buffer it if supported (halves its VMEM).
        if single_buffer_weights:
            return pl.BlockSpec(shape, lambda b: (0, 0), pipeline_mode=pl.Buffered(1))
        return pl.BlockSpec(shape, lambda b: (0, 0))

    in_specs = [
        pl.BlockSpec((Bb, N, D), lambda b: (b, 0, 0)),               # x
        const_spec((1, D)),                                          # ln gamma
        const_spec((1, D)),                                          # ln beta
        const_spec((D, 3 * D)),                                      # wqkv (bf16)
        const_spec((D, D)),                                          # wo (bf16)
        const_spec((1, D)),                                          # bo
        pl.BlockSpec((Bb, 1, N), lambda b: (b, 0, 0)),               # pad mask
    ]
    out_specs = pl.BlockSpec((Bb, N, D), lambda b: (b, 0, 0))

    kern = functools.partial(_self_attention_kernel, num_heads=H)
    return pl.pallas_call(
        kern,
        out_shape=jax.ShapeDtypeStruct((B, N, D), out_dtype),
        grid=(B // Bb,),
        in_specs=in_specs,
        out_specs=out_specs,
        compiler_params=pltpu.CompilerParams(
            dimension_semantics=("parallel",),                       # megacore / pipeline overlap
            vmem_limit_bytes=_vmem_limit_bytes(Bb, N, D),
        ),
    )(*args)


def self_attention_forward(params, x, pad_mask=None, *, batch_block=1):
    """Fused Pallas forward of SelfAttention: LN(x) -> MHA(xn, xn, pad_mask)."""
    B, N, D = x.shape
    H = params["num_heads"]
    assert D % H == 0, "num_latent_channels must be divisible by num_heads"
    assert B % batch_block == 0, "batch must be divisible by batch_block"
    Bb = batch_block

    if pad_mask is None:
        mask = jnp.zeros((B, 1, N), jnp.float32)
    else:
        mask = pad_mask.astype(jnp.float32).reshape(B, 1, N)

    args = (
        x,
        params["ln_g"].reshape(1, D).astype(jnp.float32),
        params["ln_b"].reshape(1, D).astype(jnp.float32),
        params["wqkv"],                                              # (D, 3D) bf16, scale folded
        params["wo"],                                                # (D, D) bf16
        params["bo"].reshape(1, D).astype(jnp.float32),
        mask,
    )

    try:
        return _call(args, B, N, D, H, Bb, x.dtype, single_buffer_weights=True)
    except Exception:
        # TODO(synk): pl.Buffered(1) (single-buffered grid-invariant weights)
        # not supported by this jax build -> default double buffering.
        return _call(args, B, N, D, H, Bb, x.dtype, single_buffer_weights=False)


# ----------------------------------------------------------------------------
# Parameter handling: "torch-like" f32 params for the reference, and a
# kernel-ready version (scale folded into wq, fused QKV, bf16 weights).
# ----------------------------------------------------------------------------
def init_self_attention_params(key, num_latent_channels, num_heads):
    d = num_latent_channels
    ks = jax.random.split(key, 7)
    s = 0.02
    return {
        "num_heads": num_heads,
        "ln_g": 1.0 + 0.1 * jax.random.normal(ks[3], (d,), jnp.float32),
        "ln_b": 0.1 * jax.random.normal(ks[4], (d,), jnp.float32),
        "wq": jax.random.normal(ks[0], (d, d), jnp.float32) * s,
        "wk": jax.random.normal(ks[1], (d, d), jnp.float32) * s,
        "wv": jax.random.normal(ks[2], (d, d), jnp.float32) * s,
        "wo": jax.random.normal(ks[5], (d, d), jnp.float32) * s,
        "bo": jax.random.normal(ks[6], (d,), jnp.float32) * s,
    }


def prepare_kernel_params(params):
    """Fold dp_scale into wq, fuse QKV into one (D, 3D) weight, cast to bf16."""
    H = params["num_heads"]
    D = params["wq"].shape[0]
    scale = (D // H) ** (-0.5)
    wqkv = jnp.concatenate([params["wq"] * scale, params["wk"], params["wv"]], axis=1)
    return {
        "num_heads": H,
        "ln_g": params["ln_g"],
        "ln_b": params["ln_b"],
        "wqkv": wqkv.astype(jnp.bfloat16),
        "wo": params["wo"].astype(jnp.bfloat16),
        "bo": params["bo"],
    }


# ----------------------------------------------------------------------------
# Pure-JAX reference (mirrors the PyTorch module, full f32) for the check.
# ----------------------------------------------------------------------------
def self_attention_reference(params, x, pad_mask=None):
    H = params["num_heads"]
    B, N, D = x.shape
    c = D // H

    mu = jnp.mean(x, axis=-1, keepdims=True)
    var = jnp.mean((x - mu) ** 2, axis=-1, keepdims=True)
    xn = (x - mu) / jnp.sqrt(var + LN_EPS) * params["ln_g"] + params["ln_b"]

    q = (xn @ params["wq"]).reshape(B, N, H, c).transpose(0, 2, 1, 3)
    k = (xn @ params["wk"]).reshape(B, N, H, c).transpose(0, 2, 1, 3)
    v = (xn @ params["wv"]).reshape(B, N, H, c).transpose(0, 2, 1, 3)

    s = jnp.einsum("bhic,bhjc->bhij", q, k) * (c ** (-0.5))
    if pad_mask is not None:
        s = jnp.where(pad_mask[:, None, None, :], -jnp.finfo(s.dtype).max, s)
    p = jax.nn.softmax(s, axis=-1)
    o = jnp.einsum("bhij,bhjc->bhic", p, v).transpose(0, 2, 1, 3).reshape(B, N, D)
    return o @ params["wo"] + params["bo"]


# ----------------------------------------------------------------------------
if __name__ == "__main__":
    key = jax.random.PRNGKey(0)
    B, N, D, H = 2, 16, 32, 4

    kx, kp = jax.random.split(key, 2)
    x = jax.random.normal(kx, (B, N, D), jnp.float32)
    params = init_self_attention_params(kp, num_latent_channels=D, num_heads=H)
    kernel_params = prepare_kernel_params(params)

    # Key-padding mask: last 3 tokens of every sequence are padding (True).
    # (No query row is fully padded; fully-padded rows are a degenerate case
    #  where the additive-bias formulation differs from masked_fill — both are
    #  garbage averages of padded V in that case.)
    pad_mask = jnp.broadcast_to(jnp.arange(N)[None, :] >= (N - 3), (B, N))

    out = self_attention_forward(kernel_params, x, pad_mask)
    out = jax.block_until_ready(out)

    assert out.shape == (B, N, D)
    assert bool(jnp.all(jnp.isfinite(out)))

    ref = self_attention_reference(params, x, pad_mask)
    max_err = float(jnp.max(jnp.abs(out - ref)))
    # Tolerance now only absorbs bf16 MXU operands (softmax division is exact).
    assert max_err < 1e-2, f"max_err={max_err}"

    print("KERNEL_OK")
</pallas_src>

<mosaic_0001>
module attributes {stable_mosaic.version = 11 : i64} {
  func.func @_self_attention_kernel(%arg0: i32, %arg1: memref<1x16x32xf32, #tpu.memory_space<vmem>>, %arg2: memref<1x32xf32, #tpu.memory_space<vmem>>, %arg3: memref<1x32xf32, #tpu.memory_space<vmem>>, %arg4: memref<32x96xbf16, #tpu.memory_space<vmem>>, %arg5: memref<32x32xbf16, #tpu.memory_space<vmem>>, %arg6: memref<1x32xf32, #tpu.memory_space<vmem>>, %arg7: memref<1x1x16xf32, #tpu.memory_space<vmem>>, %arg8: memref<1x16x32xf32, #tpu.memory_space<vmem>>) attributes {dimension_semantics = [#tpu.dimension_semantics<parallel>], iteration_bounds = array<i64: 2>, scalar_prefetch = 0 : i64, scratch_operands = 0 : i64, tpu.core_type = #tpu.core_type<tc>, window_params = [{transform_indices = @transform_0, window_bounds = array<i64: 1, 16, 32>}, {pipeline_mode = #tpu.pipeline_mode<synchronous>, transform_indices = @transform_1, window_bounds = array<i64: 1, 32>}, {pipeline_mode = #tpu.pipeline_mode<synchronous>, transform_indices = @transform_2, window_bounds = array<i64: 1, 32>}, {pipeline_mode = #tpu.pipeline_mode<synchronous>, transform_indices = @transform_3, window_bounds = array<i64: 32, 96>}, {pipeline_mode = #tpu.pipeline_mode<synchronous>, transform_indices = @transform_4, window_bounds = array<i64: 32, 32>}, {pipeline_mode = #tpu.pipeline_mode<synchronous>, transform_indices = @transform_5, window_bounds = array<i64: 1, 32>}, {transform_indices = @transform_6, window_bounds = array<i64: 1, 1, 16>}, {transform_indices = @transform_7, window_bounds = array<i64: 1, 16, 32>}]} {
    %c0 = arith.constant 0 : index
    %c0_0 = arith.constant 0 : index
    %c0_1 = arith.constant 0 : index
    %0 = vector.load %arg1[%c0, %c0_0, %c0_1] : memref<1x16x32xf32, #tpu.memory_space<vmem>>, vector<1x16x32xf32>
    %1 = vector.shape_cast %0 : vector<1x16x32xf32> to vector<16x32xf32>
    %cst = arith.constant dense<0.000000e+00> : vector<16xf32>
    %2 = vector.multi_reduction <add>, %1, %cst [1] : vector<16x32xf32> to vector<16xf32>
    %3 = vector.shape_cast %2 : vector<16xf32> to vector<16x1xf32>
    %cst_2 = arith.constant 3.200000e+01 : f32
    %4 = vector.broadcast %cst_2 : f32 to vector<16x1xf32>
    %5 = arith.divf %3, %4 : vector<16x1xf32>
    %6 = vector.broadcast %5 : vector<16x1xf32> to vector<16x32xf32>
    %7 = arith.subf %1, %6 : vector<16x32xf32>
    %8 = arith.mulf %7, %7 : vector<16x32xf32>
    %cst_3 = arith.constant dense<0.000000e+00> : vector<16xf32>
    %9 = vector.multi_reduction <add>, %8, %cst_3 [1] : vector<16x32xf32> to vector<16xf32>
    %10 = vector.shape_cast %9 : vector<16xf32> to vector<16x1xf32>
    %cst_4 = arith.constant 3.200000e+01 : f32
    %11 = vector.broadcast %cst_4 : f32 to vector<16x1xf32>
    %12 = arith.divf %10, %11 : vector<16x1xf32>
    %cst_5 = arith.constant 9.99999974E-6 : f32
    %13 = vector.broadcast %cst_5 : f32 to vector<16x1xf32>
    %14 = arith.addf %12, %13 : vector<16x1xf32>
    %15 = math.rsqrt %14 : vector<16x1xf32>
    %16 = vector.broadcast %15 : vector<16x1xf32> to vector<16x32xf32>
    %17 = arith.mulf %7, %16 : vector<16x32xf32>
    %c0_6 = arith.constant 0 : index
    %c0_7 = arith.constant 0 : index
    %18 = vector.load %arg2[%c0_6, %c0_7] : memref<1x32xf32, #tpu.memory_space<vmem>>, vector<1x32xf32>
    %19 = vector.broadcast %18 : vector<1x32xf32> to vector<16x32xf32>
    %20 = arith.mulf %17, %19 : vector<16x32xf32>
    %c0_8 = arith.constant 0 : index
    %c0_9 = arith.constant 0 : index
    %21 = vector.load %arg3[%c0_8, %c0_9] : memref<1x32xf32, #tpu.memory_space<vmem>>, vector<1x32xf32>
    %22 = vector.broadcast %21 : vector<1x32xf32> to vector<16x32xf32>
    %23 = arith.addf %20, %22 : vector<16x32xf32>
    %24 = arith.truncf %23 : vector<16x32xf32> to vector<16x32xbf16>
    %c0_10 = arith.constant 0 : index
    %c0_11 = arith.constant 0 : index
    %25 = vector.load %arg4[%c0_10, %c0_11] : memref<32x96xbf16, #tpu.memory_space<vmem>>, vector<32x96xbf16>
    %cst_12 = arith.constant dense<0.000000e+00> : vector<16x96xf32>
    %26 = tpu.matmul %24, %25, %cst_12 {dimension_numbers = #tpu.dot_dimension_numbers<[1], [0], [0], [1], [0, 0, 1, 1], [], []>} : vector<16x32xbf16>, vector<32x96xbf16>, vector<16x96xf32> -> vector<16x96xf32>
    %27 = arith.truncf %26 : vector<16x96xf32> to vector<16x96xbf16>
    %c0_13 = arith.constant 0 : index
    %c0_14 = arith.constant 0 : index
    %28 = vector.load %arg5[%c0_13, %c0_14] : memref<32x32xbf16, #tpu.memory_space<vmem>>, vector<32x32xbf16>
    %c0_15 = arith.constant 0 : index
    %c0_16 = arith.constant 0 : index
    %29 = vector.load %arg6[%c0_15, %c0_16] : memref<1x32xf32, #tpu.memory_space<vmem>>, vector<1x32xf32>
    %30 = vector.extract_strided_slice %27 {offsets = [0, 0], sizes = [16, 32], strides = [1, 1]} : vector<16x96xbf16> to vector<16x32xbf16>
    %31 = vector.extract_strided_slice %27 {offsets = [0, 32], sizes = [16, 32], strides = [1, 1]} : vector<16x96xbf16> to vector<16x32xbf16>
    %32 = vector.extract_strided_slice %27 {offsets = [0, 64], sizes = [16, 32], strides = [1, 1]} : vector<16x96xbf16> to vector<16x32xbf16>
    %c0_17 = arith.constant 0 : index
    %c0_18 = arith.constant 0 : index
    %c0_19 = arith.constant 0 : index
    %33 = vector.load %arg7[%c0_17, %c0_18, %c0_19] : memref<1x1x16xf32, #tpu.memory_space<vmem>>, vector<1x1x16xf32>
    %34 = vector.shape_cast %33 : vector<1x1x16xf32> to vector<1x16xf32>
    %cst_20 = arith.constant -1.000000e+30 : f32
    %35 = vector.broadcast %cst_20 : f32 to vector<1x16xf32>
    %36 = arith.mulf %34, %35 : vector<1x16xf32>
    %37 = vector.shape_cast %36 : vector<1x16xf32> to vector<1x16xf32>
    %38 = vector.broadcast %37 : vector<1x16xf32> to vector<16x16xf32>
    %cst_21 = arith.constant 0.000000e+00 : f32
    %39 = vector.broadcast %cst_21 : f32 to vector<16x32xf32>
    %40 = vector.extract_strided_slice %30 {offsets = [0, 0], sizes = [16, 8], strides = [1, 1]} : vector<16x32xbf16> to vector<16x8xbf16>
    %41 = vector.extract_strided_slice %31 {offsets = [0, 0], sizes = [16, 8], strides = [1, 1]} : vector<16x32xbf16> to vector<16x8xbf16>
    %42 = vector.extract_strided_slice %32 {offsets = [0, 0], sizes = [16, 8], strides = [1, 1]} : vector<16x32xbf16> to vector<16x8xbf16>
    %cst_22 = arith.constant dense<0.000000e+00> : vector<16x16xf32>
    %43 = tpu.matmul %40, %41, %cst_22 {dimension_numbers = #tpu.dot_dimension_numbers<[1], [1], [0], [0], [0, 0, 1, 0], [], []>} : vector<16x8xbf16>, vector<16x8xbf16>, vector<16x16xf32> -> vector<16x16xf32>
    %44 = arith.addf %43, %38 : vector<16x16xf32>
    %cst_23 = arith.constant dense<0xFF800000> : vector<16xf32>
    %45 = vector.multi_reduction <maximumf>, %44, %cst_23 [1] : vector<16x16xf32> to vector<16xf32>
    %46 = vector.shape_cast %45 : vector<16xf32> to vector<16x1xf32>
    %47 = vector.broadcast %46 : vector<16x1xf32> to vector<16x16xf32>
    %48 = arith.subf %44, %47 : vector<16x16xf32>
    %49 = math.exp %48 : vector<16x16xf32>
    %cst_24 = arith.constant dense<0.000000e+00> : vector<16xf32>
    %50 = vector.multi_reduction <add>, %49, %cst_24 [1] : vector<16x16xf32> to vector<16xf32>
    %51 = vector.shape_cast %50 : vector<16xf32> to vector<16x1xf32>
    %cst_25 = arith.constant 1.000000e+00 : f32
    %52 = vector.broadcast %cst_25 : f32 to vector<16x1xf32>
    %53 = arith.divf %52, %51 : vector<16x1xf32>
    %54 = arith.truncf %49 : vector<16x16xf32> to vector<16x16xbf16>
    %cst_26 = arith.constant dense<0.000000e+00> : vector<16x8xf32>
    %55 = tpu.matmul %54, %42, %cst_26 {dimension_numbers = #tpu.dot_dimension_numbers<[1], [0], [0], [1], [0, 0, 1, 1], [], []>} : vector<16x16xbf16>, vector<16x8xbf16>, vector<16x8xf32> -> vector<16x8xf32>
    %56 = vector.broadcast %53 : vector<16x1xf32> to vector<16x8xf32>
    %57 = arith.mulf %55, %56 : vector<16x8xf32>
    %58 = arith.truncf %57 : vector<16x8xf32> to vector<16x8xbf16>
    %59 = vector.extract_strided_slice %28 {offsets = [0, 0], sizes = [8, 32], strides = [1, 1]} : vector<32x32xbf16> to vector<8x32xbf16>
    %cst_27 = arith.constant dense<0.000000e+00> : vector<16x32xf32>
    %60 = tpu.matmul %58, %59, %cst_27 {dimension_numbers = #tpu.dot_dimension_numbers<[1], [0], [0], [1], [0, 0, 1, 1], [], []>} : vector<16x8xbf16>, vector<8x32xbf16>, vector<16x32xf32> -> vector<16x32xf32>
    %61 = arith.addf %39, %60 : vector<16x32xf32>
    %62 = vector.extract_strided_slice %30 {offsets = [0, 8], sizes = [16, 8], strides = [1, 1]} : vector<16x32xbf16> to vector<16x8xbf16>
    %63 = vector.extract_strided_slice %31 {offsets = [0, 8], sizes = [16, 8], strides = [1, 1]} : vector<16x32xbf16> to vector<16x8xbf16>
    %64 = vector.extract_strided_slice %32 {offsets = [0, 8], sizes = [16, 8], strides = [1, 1]} : vector<16x32xbf16> to vector<16x8xbf16>
    %cst_28 = arith.constant dense<0.000000e+00> : vector<16x16xf32>
    %65 = tpu.matmul %62, %63, %cst_28 {dimension_numbers = #tpu.dot_dimension_numbers<[1], [1], [0], [0], [0, 0, 1, 0], [], []>} : vector<16x8xbf16>, vector<16x8xbf16>, vector<16x16xf32> -> vector<16x16xf32>
    %66 = arith.addf %65, %38 : vector<16x16xf32>
    %cst_29 = arith.constant dense<0xFF800000> : vector<16xf32>
    %67 = vector.multi_reduction <maximumf>, %66, %cst_29 [1] : vector<16x16xf32> to vector<16xf32>
    %68 = vector.shape_cast %67 : vector<16xf32> to vector<16x1xf32>
    %69 = vector.broadcast %68 : vector<16x1xf32> to vector<16x16xf32>
    %70 = arith.subf %66, %69 : vector<16x16xf32>
    %71 = math.exp %70 : vector<16x16xf32>
    %cst_30 = arith.constant dense<0.000000e+00> : vector<16xf32>
    %72 = vector.multi_reduction <add>, %71, %cst_30 [1] : vector<16x16xf32> to vector<16xf32>
    %73 = vector.shape_cast %72 : vector<16xf32> to vector<16x1xf32>
    %cst_31 = arith.constant 1.000000e+00 : f32
    %74 = vector.broadcast %cst_31 : f32 to vector<16x1xf32>
    %75 = arith.divf %74, %73 : vector<16x1xf32>
    %76 = arith.truncf %71 : vector<16x16xf32> to vector<16x16xbf16>
    %cst_32 = arith.constant dense<0.000000e+00> : vector<16x8xf32>
    %77 = tpu.matmul %76, %64, %cst_32 {dimension_numbers = #tpu.dot_dimension_numbers<[1], [0], [0], [1], [0, 0, 1, 1], [], []>} : vector<16x16xbf16>, vector<16x8xbf16>, vector<16x8xf32> -> vector<16x8xf32>
    %78 = vector.broadcast %75 : vector<16x1xf32> to vector<16x8xf32>
    %79 = arith.mulf %77, %78 : vector<16x8xf32>
    %80 = arith.truncf %79 : vector<16x8xf32> to vector<16x8xbf16>
    %81 = vector.extract_strided_slice %28 {offsets = [8, 0], sizes = [8, 32], strides = [1, 1]} : vector<32x32xbf16> to vector<8x32xbf16>
    %cst_33 = arith.constant dense<0.000000e+00> : vector<16x32xf32>
    %82 = tpu.matmul %80, %81, %cst_33 {dimension_numbers = #tpu.dot_dimension_numbers<[1], [0], [0], [1], [0, 0, 1, 1], [], []>} : vector<16x8xbf16>, vector<8x32xbf16>, vector<16x32xf32> -> vector<16x32xf32>
    %83 = arith.addf %61, %82 : vector<16x32xf32>
    %84 = vector.extract_strided_slice %30 {offsets = [0, 16], sizes = [16, 8], strides = [1, 1]} : vector<16x32xbf16> to vector<16x8xbf16>
    %85 = vector.extract_strided_slice %31 {offsets = [0, 16], sizes = [16, 8], strides = [1, 1]} : vector<16x32xbf16> to vector<16x8xbf16>
    %86 = vector.extract_strided_slice %32 {offsets = [0, 16], sizes = [16, 8], strides = [1, 1]} : vector<16x32xbf16> to vector<16x8xbf16>
    %cst_34 = arith.constant dense<0.000000e+00> : vector<16x16xf32>
    %87 = tpu.matmul %84, %85, %cst_34 {dimension_numbers = #tpu.dot_dimension_numbers<[1], [1], [0], [0], [0, 0, 1, 0], [], []>} : vector<16x8xbf16>, vector<16x8xbf16>, vector<16x16xf32> -> vector<16x16xf32>
    %88 = arith.addf %87, %38 : vector<16x16xf32>
    %cst_35 = arith.constant dense<0xFF800000> : vector<16xf32>
    %89 = vector.multi_reduction <maximumf>, %88, %cst_35 [1] : vector<16x16xf32> to vector<16xf32>
    %90 = vector.shape_cast %89 : vector<16xf32> to vector<16x1xf32>
    %91 = vector.broadcast %90 : vector<16x1xf32> to vector<16x16xf32>
    %92 = arith.subf %88, %91 : vector<16x16xf32>
    %93 = math.exp %92 : vector<16x16xf32>
    %cst_36 = arith.constant dense<0.000000e+00> : vector<16xf32>
    %94 = vector.multi_reduction <add>, %93, %cst_36 [1] : vector<16x16xf32> to vector<16xf32>
    %95 = vector.shape_cast %94 : vector<16xf32> to vector<16x1xf32>
    %cst_37 = arith.constant 1.000000e+00 : f32
    %96 = vector.broadcast %cst_37 : f32 to vector<16x1xf32>
    %97 = arith.divf %96, %95 : vector<16x1xf32>
    %98 = arith.truncf %93 : vector<16x16xf32> to vector<16x16xbf16>
    %cst_38 = arith.constant dense<0.000000e+00> : vector<16x8xf32>
    %99 = tpu.matmul %98, %86, %cst_38 {dimension_numbers = #tpu.dot_dimension_numbers<[1], [0], [0], [1], [0, 0, 1, 1], [], []>} : vector<16x16xbf16>, vector<16x8xbf16>, vector<16x8xf32> -> vector<16x8xf32>
    %100 = vector.broadcast %97 : vector<16x1xf32> to vector<16x8xf32>
    %101 = arith.mulf %99, %100 : vector<16x8xf32>
    %102 = arith.truncf %101 : vector<16x8xf32> to vector<16x8xbf16>
    %103 = vector.extract_strided_slice %28 {offsets = [16, 0], sizes = [8, 32], strides = [1, 1]} : vector<32x32xbf16> to vector<8x32xbf16>
    %cst_39 = arith.constant dense<0.000000e+00> : vector<16x32xf32>
    %104 = tpu.matmul %102, %103, %cst_39 {dimension_numbers = #tpu.dot_dimension_numbers<[1], [0], [0], [1], [0, 0, 1, 1], [], []>} : vector<16x8xbf16>, vector<8x32xbf16>, vector<16x32xf32> -> vector<16x32xf32>
    %105 = arith.addf %83, %104 : vector<16x32xf32>
    %106 = vector.extract_strided_slice %30 {offsets = [0, 24], sizes = [16, 8], strides = [1, 1]} : vector<16x32xbf16> to vector<16x8xbf16>
    %107 = vector.extract_strided_slice %31 {offsets = [0, 24], sizes = [16, 8], strides = [1, 1]} : vector<16x32xbf16> to vector<16x8xbf16>
    %108 = vector.extract_strided_slice %32 {offsets = [0, 24], sizes = [16, 8], strides = [1, 1]} : vector<16x32xbf16> to vector<16x8xbf16>
    %cst_40 = arith.constant dense<0.000000e+00> : vector<16x16xf32>
    %109 = tpu.matmul %106, %107, %cst_40 {dimension_numbers = #tpu.dot_dimension_numbers<[1], [1], [0], [0], [0, 0, 1, 0], [], []>} : vector<16x8xbf16>, vector<16x8xbf16>, vector<16x16xf32> -> vector<16x16xf32>
    %110 = arith.addf %109, %38 : vector<16x16xf32>
    %cst_41 = arith.constant dense<0xFF800000> : vector<16xf32>
    %111 = vector.multi_reduction <maximumf>, %110, %cst_41 [1] : vector<16x16xf32> to vector<16xf32>
    %112 = vector.shape_cast %111 : vector<16xf32> to vector<16x1xf32>
    %113 = vector.broadcast %112 : vector<16x1xf32> to vector<16x16xf32>
    %114 = arith.subf %110, %113 : vector<16x16xf32>
    %115 = math.exp %114 : vector<16x16xf32>
    %cst_42 = arith.constant dense<0.000000e+00> : vector<16xf32>
    %116 = vector.multi_reduction <add>, %115, %cst_42 [1] : vector<16x16xf32> to vector<16xf32>
    %117 = vector.shape_cast %116 : vector<16xf32> to vector<16x1xf32>
    %cst_43 = arith.constant 1.000000e+00 : f32
    %118 = vector.broadcast %cst_43 : f32 to vector<16x1xf32>
    %119 = arith.divf %118, %117 : vector<16x1xf32>
    %120 = arith.truncf %115 : vector<16x16xf32> to vector<16x16xbf16>
    %cst_44 = arith.constant dense<0.000000e+00> : vector<16x8xf32>
    %121 = tpu.matmul %120, %108, %cst_44 {dimension_numbers = #tpu.dot_dimension_numbers<[1], [0], [0], [1], [0, 0, 1, 1], [], []>} : vector<16x16xbf16>, vector<16x8xbf16>, vector<16x8xf32> -> vector<16x8xf32>
    %122 = vector.broadcast %119 : vector<16x1xf32> to vector<16x8xf32>
    %123 = arith.mulf %121, %122 : vector<16x8xf32>
    %124 = arith.truncf %123 : vector<16x8xf32> to vector<16x8xbf16>
    %125 = vector.extract_strided_slice %28 {offsets = [24, 0], sizes = [8, 32], strides = [1, 1]} : vector<32x32xbf16> to vector<8x32xbf16>
    %cst_45 = arith.constant dense<0.000000e+00> : vector<16x32xf32>
    %126 = tpu.matmul %124, %125, %cst_45 {dimension_numbers = #tpu.dot_dimension_numbers<[1], [0], [0], [1], [0, 0, 1, 1], [], []>} : vector<16x8xbf16>, vector<8x32xbf16>, vector<16x32xf32> -> vector<16x32xf32>
    %127 = arith.addf %105, %126 : vector<16x32xf32>
    %128 = vector.broadcast %29 : vector<1x32xf32> to vector<16x32xf32>
    %129 = arith.addf %127, %128 : vector<16x32xf32>
    %c0_46 = arith.constant 0 : index
    %c0_47 = arith.constant 0 : index
    %c0_48 = arith.constant 0 : index
    %130 = vector.load %arg8[%c0_46, %c0_47, %c0_48] : memref<1x16x32xf32, #tpu.memory_space<vmem>>, vector<1x16x32xf32>
    %131 = vector.shape_cast %130 : vector<1x16x32xf32> to vector<16x32xf32>
    %132 = vector.shape_cast %129 : vector<16x32xf32> to vector<1x16x32xf32>
    tpu.vector_store %arg8[%c0_46, %c0_47, %c0_48], %132 {strides = array<i32>} : memref<1x16x32xf32, #tpu.memory_space<vmem>>, vector<1x16x32xf32>,
    return
  }
  func.func @transform_0(%arg0: i32) -> (i32, i32, i32) {
    %c0_i32 = arith.constant 0 : i32
    %c0_i32_0 = arith.constant 0 : i32
    %c0_i32_1 = arith.constant 0 : i32
    return %arg0, %c0_i32, %c0_i32_0 : i32, i32, i32
  }
  func.func @transform_1(%arg0: i32) -> (i32, i32) {
    %c0_i32 = arith.constant 0 : i32
    %c0_i32_0 = arith.constant 0 : i32
    %c0_i32_1 = arith.constant 0 : i32
    return %c0_i32, %c0_i32_0 : i32, i32
  }
  func.func @transform_2(%arg0: i32) -> (i32, i32) {
    %c0_i32 = arith.constant 0 : i32
    %c0_i32_0 = arith.constant 0 : i32
    %c0_i32_1 = arith.constant 0 : i32
    return %c0_i32, %c0_i32_0 : i32, i32
  }
  func.func @transform_3(%arg0: i32) -> (i32, i32) {
    %c0_i32 = arith.constant 0 : i32
    %c0_i32_0 = arith.constant 0 : i32
    %c0_i32_1 = arith.constant 0 : i32
    return %c0_i32, %c0_i32_0 : i32, i32
  }
  func.func @transform_4(%arg0: i32) -> (i32, i32) {
    %c0_i32 = arith.constant 0 : i32
    %c0_i32_0 = arith.constant 0 : i32
    %c0_i32_1 = arith.constant 0 : i32
    return %c0_i32, %c0_i32_0 : i32, i32
  }
  func.func @transform_5(%arg0: i32) -> (i32, i32) {
    %c0_i32 = arith.constant 0 : i32
    %c0_i32_0 = arith.constant 0 : i32
    %c0_i32_1 = arith.constant 0 : i32
    return %c0_i32, %c0_i32_0 : i32, i32
  }
  func.func @transform_6(%arg0: i32) -> (i32, i32, i32) {
    %c0_i32 = arith.constant 0 : i32
    %c0_i32_0 = arith.constant 0 : i32
    %c0_i32_1 = arith.constant 0 : i32
    return %arg0, %c0_i32, %c0_i32_0 : i32, i32, i32
  }
  func.func @transform_7(%arg0: i32) -> (i32, i32, i32) {
    %c0_i32 = arith.constant 0 : i32
    %c0_i32_0 = arith.constant 0 : i32
    %c0_i32_1 = arith.constant 0 : i32
    return %arg0, %c0_i32, %c0_i32_0 : i32, i32, i32
  }
}

module attributes {stable_mosaic.version = 11 : i64} {
  func.func @_self_attention_kernel(%arg0: i32, %arg1: memref<1x16x32xf32, #tpu.memory_space<vmem>>, %arg2: memref<1x32xf32, #tpu.memory_space<vmem>>, %arg3: memref<1x32xf32, #tpu.memory_space<vmem>>, %arg4: memref<32x96xbf16, #tpu.memory_space<vmem>>, %arg5: memref<32x32xbf16, #tpu.memory_space<vmem>>, %arg6: memref<1x32xf32, #tpu.memory_space<vmem>>, %arg7: memref<1x1x16xf32, #tpu.memory_space<vmem>>, %arg8: memref<1x16x32xf32, #tpu.memory_space<vmem>>) attributes {dimension_semantics = [#tpu.dimension_semantics<parallel>], iteration_bounds = array<i64: 2>, scalar_prefetch = 0 : i64, scratch_operands = 0 : i64, tpu.core_type = #tpu.core_type<tc>, window_params = [{transform_indices = @transform_0, window_bounds = array<i64: 1, 16, 32>}, {pipeline_mode = #tpu.pipeline_mode<synchronous>, transform_indices = @transform_1, window_bounds = array<i64: 1, 32>}, {pipeline_mode = #tpu.pipeline_mode<synchronous>, transform_indices = @transform_2, window_bounds = array<i64: 1, 32>}, {pipeline_mode = #tpu.pipeline_mode<synchronous>, transform_indices = @transform_3, window_bounds = array<i64: 32, 96>}, {pipeline_mode = #tpu.pipeline_mode<synchronous>, transform_indices = @transform_4, window_bounds = array<i64: 32, 32>}, {pipeline_mode = #tpu.pipeline_mode<synchronous>, transform_indices = @transform_5, window_bounds = array<i64: 1, 32>}, {transform_indices = @transform_6, window_bounds = array<i64: 1, 1, 16>}, {transform_indices = @transform_7, window_bounds = array<i64: 1, 16, 32>}]} {
    %c0 = arith.constant 0 : index
    %c0_0 = arith.constant 0 : index
    %c0_1 = arith.constant 0 : index
    %0 = vector.load %arg1[%c0, %c0_0, %c0_1] : memref<1x16x32xf32, #tpu.memory_space<vmem>>, vector<1x16x32xf32>
    %1 = vector.shape_cast %0 : vector<1x16x32xf32> to vector<16x32xf32>
    %cst = arith.constant dense<0.000000e+00> : vector<16xf32>
    %2 = vector.multi_reduction <add>, %1, %cst [1] : vector<16x32xf32> to vector<16xf32>
    %3 = vector.shape_cast %2 : vector<16xf32> to vector<16x1xf32>
    %cst_2 = arith.constant 3.200000e+01 : f32
    %4 = vector.broadcast %cst_2 : f32 to vector<16x1xf32>
    %5 = arith.divf %3, %4 : vector<16x1xf32>
    %6 = vector.broadcast %5 : vector<16x1xf32> to vector<16x32xf32>
    %7 = arith.subf %1, %6 : vector<16x32xf32>
    %8 = arith.mulf %7, %7 : vector<16x32xf32>
    %cst_3 = arith.constant dense<0.000000e+00> : vector<16xf32>
    %9 = vector.multi_reduction <add>, %8, %cst_3 [1] : vector<16x32xf32> to vector<16xf32>
    %10 = vector.shape_cast %9 : vector<16xf32> to vector<16x1xf32>
    %cst_4 = arith.constant 3.200000e+01 : f32
    %11 = vector.broadcast %cst_4 : f32 to vector<16x1xf32>
    %12 = arith.divf %10, %11 : vector<16x1xf32>
    %cst_5 = arith.constant 9.99999974E-6 : f32
    %13 = vector.broadcast %cst_5 : f32 to vector<16x1xf32>
    %14 = arith.addf %12, %13 : vector<16x1xf32>
    %15 = math.rsqrt %14 : vector<16x1xf32>
    %16 = vector.broadcast %15 : vector<16x1xf32> to vector<16x32xf32>
    %17 = arith.mulf %7, %16 : vector<16x32xf32>
    %c0_6 = arith.constant 0 : index
    %c0_7 = arith.constant 0 : index
    %18 = vector.load %arg2[%c0_6, %c0_7] : memref<1x32xf32, #tpu.memory_space<vmem>>, vector<1x32xf32>
    %19 = vector.broadcast %18 : vector<1x32xf32> to vector<16x32xf32>
    %20 = arith.mulf %17, %19 : vector<16x32xf32>
    %c0_8 = arith.constant 0 : index
    %c0_9 = arith.constant 0 : index
    %21 = vector.load %arg3[%c0_8, %c0_9] : memref<1x32xf32, #tpu.memory_space<vmem>>, vector<1x32xf32>
    %22 = vector.broadcast %21 : vector<1x32xf32> to vector<16x32xf32>
    %23 = arith.addf %20, %22 : vector<16x32xf32>
    %24 = arith.truncf %23 : vector<16x32xf32> to vector<16x32xbf16>
    %c0_10 = arith.constant 0 : index
    %c0_11 = arith.constant 0 : index
    %25 = vector.load %arg4[%c0_10, %c0_11] : memref<32x96xbf16, #tpu.memory_space<vmem>>, vector<32x96xbf16>
    %cst_12 = arith.constant dense<0.000000e+00> : vector<16x96xf32>
    %26 = tpu.matmul %24, %25, %cst_12 {dimension_numbers = #tpu.dot_dimension_numbers<[1], [0], [0], [1], [0, 0, 1, 1], [], []>} : vector<16x32xbf16>, vector<32x96xbf16>, vector<16x96xf32> -> vector<16x96xf32>
    %27 = arith.truncf %26 : vector<16x96xf32> to vector<16x96xbf16>
    %c0_13 = arith.constant 0 : index
    %c0_14 = arith.constant 0 : index
    %28 = vector.load %arg5[%c0_13, %c0_14] : memref<32x32xbf16, #tpu.memory_space<vmem>>, vector<32x32xbf16>
    %c0_15 = arith.constant 0 : index
    %c0_16 = arith.constant 0 : index
    %29 = vector.load %arg6[%c0_15, %c0_16] : memref<1x32xf32, #tpu.memory_space<vmem>>, vector<1x32xf32>
    %30 = vector.extract_strided_slice %27 {offsets = [0, 0], sizes = [16, 32], strides = [1, 1]} : vector<16x96xbf16> to vector<16x32xbf16>
    %31 = vector.extract_strided_slice %27 {offsets = [0, 32], sizes = [16, 32], strides = [1, 1]} : vector<16x96xbf16> to vector<16x32xbf16>
    %32 = vector.extract_strided_slice %27 {offsets = [0, 64], sizes = [16, 32], strides = [1, 1]} : vector<16x96xbf16> to vector<16x32xbf16>
    %c0_17 = arith.constant 0 : index
    %c0_18 = arith.constant 0 : index
    %c0_19 = arith.constant 0 : index
    %33 = vector.load %arg7[%c0_17, %c0_18, %c0_19] : memref<1x1x16xf32, #tpu.memory_space<vmem>>, vector<1x1x16xf32>
    %34 = vector.shape_cast %33 : vector<1x1x16xf32> to vector<1x16xf32>
    %cst_20 = arith.constant -1.000000e+30 : f32
    %35 = vector.broadcast %cst_20 : f32 to vector<1x16xf32>
    %36 = arith.mulf %34, %35 : vector<1x16xf32>
    %37 = vector.shape_cast %36 : vector<1x16xf32> to vector<1x16xf32>
    %38 = vector.broadcast %37 : vector<1x16xf32> to vector<16x16xf32>
    %cst_21 = arith.constant 0.000000e+00 : f32
    %39 = vector.broadcast %cst_21 : f32 to vector<16x32xf32>
    %40 = vector.extract_strided_slice %30 {offsets = [0, 0], sizes = [16, 8], strides = [1, 1]} : vector<16x32xbf16> to vector<16x8xbf16>
    %41 = vector.extract_strided_slice %31 {offsets = [0, 0], sizes = [16, 8], strides = [1, 1]} : vector<16x32xbf16> to vector<16x8xbf16>
    %42 = vector.extract_strided_slice %32 {offsets = [0, 0], sizes = [16, 8], strides = [1, 1]} : vector<16x32xbf16> to vector<16x8xbf16>
    %cst_22 = arith.constant dense<0.000000e+00> : vector<16x16xf32>
    %43 = tpu.matmul %40, %41, %cst_22 {dimension_numbers = #tpu.dot_dimension_numbers<[1], [1], [0], [0], [0, 0, 1, 0], [], []>} : vector<16x8xbf16>, vector<16x8xbf16>, vector<16x16xf32> -> vector<16x16xf32>
    %44 = arith.addf %43, %38 : vector<16x16xf32>
    %cst_23 = arith.constant dense<0xFF800000> : vector<16xf32>
    %45 = vector.multi_reduction <maximumf>, %44, %cst_23 [1] : vector<16x16xf32> to vector<16xf32>
    %46 = vector.shape_cast %45 : vector<16xf32> to vector<16x1xf32>
    %47 = vector.broadcast %46 : vector<16x1xf32> to vector<16x16xf32>
    %48 = arith.subf %44, %47 : vector<16x16xf32>
    %49 = math.exp %48 : vector<16x16xf32>
    %cst_24 = arith.constant dense<0.000000e+00> : vector<16xf32>
    %50 = vector.multi_reduction <add>, %49, %cst_24 [1] : vector<16x16xf32> to vector<16xf32>
    %51 = vector.shape_cast %50 : vector<16xf32> to vector<16x1xf32>
    %cst_25 = arith.constant 1.000000e+00 : f32
    %52 = vector.broadcast %cst_25 : f32 to vector<16x1xf32>
    %53 = arith.divf %52, %51 : vector<16x1xf32>
    %54 = arith.truncf %49 : vector<16x16xf32> to vector<16x16xbf16>
    %cst_26 = arith.constant dense<0.000000e+00> : vector<16x8xf32>
    %55 = tpu.matmul %54, %42, %cst_26 {dimension_numbers = #tpu.dot_dimension_numbers<[1], [0], [0], [1], [0, 0, 1, 1], [], []>} : vector<16x16xbf16>, vector<16x8xbf16>, vector<16x8xf32> -> vector<16x8xf32>
    %56 = vector.broadcast %53 : vector<16x1xf32> to vector<16x8xf32>
    %57 = arith.mulf %55, %56 : vector<16x8xf32>
    %58 = arith.truncf %57 : vector<16x8xf32> to vector<16x8xbf16>
    %59 = vector.extract_strided_slice %28 {offsets = [0, 0], sizes = [8, 32], strides = [1, 1]} : vector<32x32xbf16> to vector<8x32xbf16>
    %cst_27 = arith.constant dense<0.000000e+00> : vector<16x32xf32>
    %60 = tpu.matmul %58, %59, %cst_27 {dimension_numbers = #tpu.dot_dimension_numbers<[1], [0], [0], [1], [0, 0, 1, 1], [], []>} : vector<16x8xbf16>, vector<8x32xbf16>, vector<16x32xf32> -> vector<16x32xf32>
    %61 = arith.addf %39, %60 : vector<16x32xf32>
    %62 = vector.extract_strided_slice %30 {offsets = [0, 8], sizes = [16, 8], strides = [1, 1]} : vector<16x32xbf16> to vector<16x8xbf16>
    %63 = vector.extract_strided_slice %31 {offsets = [0, 8], sizes = [16, 8], strides = [1, 1]} : vector<16x32xbf16> to vector<16x8xbf16>
    %64 = vector.extract_strided_slice %32 {offsets = [0, 8], sizes = [16, 8], strides = [1, 1]} : vector<16x32xbf16> to vector<16x8xbf16>
    %cst_28 = arith.constant dense<0.000000e+00> : vector<16x16xf32>
    %65 = tpu.matmul %62, %63, %cst_28 {dimension_numbers = #tpu.dot_dimension_numbers<[1], [1], [0], [0], [0, 0, 1, 0], [], []>} : vector<16x8xbf16>, vector<16x8xbf16>, vector<16x16xf32> -> vector<16x16xf32>
    %66 = arith.addf %65, %38 : vector<16x16xf32>
    %cst_29 = arith.constant dense<0xFF800000> : vector<16xf32>
    %67 = vector.multi_reduction <maximumf>, %66, %cst_29 [1] : vector<16x16xf32> to vector<16xf32>
    %68 = vector.shape_cast %67 : vector<16xf32> to vector<16x1xf32>
    %69 = vector.broadcast %68 : vector<16x1xf32> to vector<16x16xf32>
    %70 = arith.subf %66, %69 : vector<16x16xf32>
    %71 = math.exp %70 : vector<16x16xf32>
    %cst_30 = arith.constant dense<0.000000e+00> : vector<16xf32>
    %72 = vector.multi_reduction <add>, %71, %cst_30 [1] : vector<16x16xf32> to vector<16xf32>
    %73 = vector.shape_cast %72 : vector<16xf32> to vector<16x1xf32>
    %cst_31 = arith.constant 1.000000e+00 : f32
    %74 = vector.broadcast %cst_31 : f32 to vector<16x1xf32>
    %75 = arith.divf %74, %73 : vector<16x1xf32>
    %76 = arith.truncf %71 : vector<16x16xf32> to vector<16x16xbf16>
    %cst_32 = arith.constant dense<0.000000e+00> : vector<16x8xf32>
    %77 = tpu.matmul %76, %64, %cst_32 {dimension_numbers = #tpu.dot_dimension_numbers<[1], [0], [0], [1], [0, 0, 1, 1], [], []>} : vector<16x16xbf16>, vector<16x8xbf16>, vector<16x8xf32> -> vector<16x8xf32>
    %78 = vector.broadcast %75 : vector<16x1xf32> to vector<16x8xf32>
    %79 = arith.mulf %77, %78 : vector<16x8xf32>
    %80 = arith.truncf %79 : vector<16x8xf32> to vector<16x8xbf16>
    %81 = vector.extract_strided_slice %28 {offsets = [8, 0], sizes = [8, 32], strides = [1, 1]} : vector<32x32xbf16> to vector<8x32xbf16>
    %cst_33 = arith.constant dense<0.000000e+00> : vector<16x32xf32>
    %82 = tpu.matmul %80, %81, %cst_33 {dimension_numbers = #tpu.dot_dimension_numbers<[1], [0], [0], [1], [0, 0, 1, 1], [], []>} : vector<16x8xbf16>, vector<8x32xbf16>, vector<16x32xf32> -> vector<16x32xf32>
    %83 = arith.addf %61, %82 : vector<16x32xf32>
    %84 = vector.extract_strided_slice %30 {offsets = [0, 16], sizes = [16, 8], strides = [1, 1]} : vector<16x32xbf16> to vector<16x8xbf16>
    %85 = vector.extract_strided_slice %31 {offsets = [0, 16], sizes = [16, 8], strides = [1, 1]} : vector<16x32xbf16> to vector<16x8xbf16>
    %86 = vector.extract_strided_slice %32 {offsets = [0, 16], sizes = [16, 8], strides = [1, 1]} : vector<16x32xbf16> to vector<16x8xbf16>
    %cst_34 = arith.constant dense<0.000000e+00> : vector<16x16xf32>
    %87 = tpu.matmul %84, %85, %cst_34 {dimension_numbers = #tpu.dot_dimension_numbers<[1], [1], [0], [0], [0, 0, 1, 0], [], []>} : vector<16x8xbf16>, vector<16x8xbf16>, vector<16x16xf32> -> vector<16x16xf32>
    %88 = arith.addf %87, %38 : vector<16x16xf32>
    %cst_35 = arith.constant dense<0xFF800000> : vector<16xf32>
    %89 = vector.multi_reduction <maximumf>, %88, %cst_35 [1] : vector<16x16xf32> to vector<16xf32>
    %90 = vector.shape_cast %89 : vector<16xf32> to vector<16x1xf32>
    %91 = vector.broadcast %90 : vector<16x1xf32> to vector<16x16xf32>
    %92 = arith.subf %88, %91 : vector<16x16xf32>
    %93 = math.exp %92 : vector<16x16xf32>
    %cst_36 = arith.constant dense<0.000000e+00> : vector<16xf32>
    %94 = vector.multi_reduction <add>, %93, %cst_36 [1] : vector<16x16xf32> to vector<16xf32>
    %95 = vector.shape_cast %94 : vector<16xf32> to vector<16x1xf32>
    %cst_37 = arith.constant 1.000000e+00 : f32
    %96 = vector.broadcast %cst_37 : f32 to vector<16x1xf32>
    %97 = arith.divf %96, %95 : vector<16x1xf32>
    %98 = arith.truncf %93 : vector<16x16xf32> to vector<16x16xbf16>
    %cst_38 = arith.constant dense<0.000000e+00> : vector<16x8xf32>
    %99 = tpu.matmul %98, %86, %cst_38 {dimension_numbers = #tpu.dot_dimension_numbers<[1], [0], [0], [1], [0, 0, 1, 1], [], []>} : vector<16x16xbf16>, vector<16x8xbf16>, vector<16x8xf32> -> vector<16x8xf32>
    %100 = vector.broadcast %97 : vector<16x1xf32> to vector<16x8xf32>
    %101 = arith.mulf %99, %100 : vector<16x8xf32>
    %102 = arith.truncf %101 : vector<16x8xf32> to vector<16x8xbf16>
    %103 = vector.extract_strided_slice %28 {offsets = [16, 0], sizes = [8, 32], strides = [1, 1]} : vector<32x32xbf16> to vector<8x32xbf16>
    %cst_39 = arith.constant dense<0.000000e+00> : vector<16x32xf32>
    %104 = tpu.matmul %102, %103, %cst_39 {dimension_numbers = #tpu.dot_dimension_numbers<[1], [0], [0], [1], [0, 0, 1, 1], [], []>} : vector<16x8xbf16>, vector<8x32xbf16>, vector<16x32xf32> -> vector<16x32xf32>
    %105 = arith.addf %83, %104 : vector<16x32xf32>
    %106 = vector.extract_strided_slice %30 {offsets = [0, 24], sizes = [16, 8], strides = [1, 1]} : vector<16x32xbf16> to vector<16x8xbf16>
    %107 = vector.extract_strided_slice %31 {offsets = [0, 24], sizes = [16, 8], strides = [1, 1]} : vector<16x32xbf16> to vector<16x8xbf16>
    %108 = vector.extract_strided_slice %32 {offsets = [0, 24], sizes = [16, 8], strides = [1, 1]} : vector<16x32xbf16> to vector<16x8xbf16>
    %cst_40 = arith.constant dense<0.000000e+00> : vector<16x16xf32>
    %109 = tpu.matmul %106, %107, %cst_40 {dimension_numbers = #tpu.dot_dimension_numbers<[1], [1], [0], [0], [0, 0, 1, 0], [], []>} : vector<16x8xbf16>, vector<16x8xbf16>, vector<16x16xf32> -> vector<16x16xf32>
    %110 = arith.addf %109, %38 : vector<16x16xf32>
    %cst_41 = arith.constant dense<0xFF800000> : vector<16xf32>
    %111 = vector.multi_reduction <maximumf>, %110, %cst_41 [1] : vector<16x16xf32> to vector<16xf32>
    %112 = vector.shape_cast %111 : vector<16xf32> to vector<16x1xf32>
    %113 = vector.broadcast %112 : vector<16x1xf32> to vector<16x16xf32>
    %114 = arith.subf %110, %113 : vector<16x16xf32>
    %115 = math.exp %114 : vector<16x16xf32>
    %cst_42 = arith.constant dense<0.000000e+00> : vector<16xf32>
    %116 = vector.multi_reduction <add>, %115, %cst_42 [1] : vector<16x16xf32> to vector<16xf32>
    %117 = vector.shape_cast %116 : vector<16xf32> to vector<16x1xf32>
    %cst_43 = arith.constant 1.000000e+00 : f32
    %118 = vector.broadcast %cst_43 : f32 to vector<16x1xf32>
    %119 = arith.divf %118, %117 : vector<16x1xf32>
    %120 = arith.truncf %115 : vector<16x16xf32> to vector<16x16xbf16>
    %cst_44 = arith.constant dense<0.000000e+00> : vector<16x8xf32>
    %121 = tpu.matmul %120, %108, %cst_44 {dimension_numbers = #tpu.dot_dimension_numbers<[1], [0], [0], [1], [0, 0, 1, 1], [], []>} : vector<16x16xbf16>, vector<16x8xbf16>, vector<16x8xf32> -> vector<16x8xf32>
    %122 = vector.broadcast %119 : vector<16x1xf32> to vector<16x8xf32>
    %123 = arith.mulf %121, %122 : vector<16x8xf32>
    %124 = arith.truncf %123 : vector<16x8xf32> to vector<16x8xbf16>
    %125 = vector.extract_strided_slice %28 {offsets = [24, 0], sizes = [8, 32], strides = [1, 1]} : vector<32x32xbf16> to vector<8x32xbf16>
    %cst_45 = arith.constant dense<0.000000e+00> : vector<16x32xf32>
    %126 = tpu.matmul %124, %125, %cst_45 {dimension_numbers = #tpu.dot_dimension_numbers<[1], [0], [0], [1], [0, 0, 1, 1], [], []>} : vector<16x8xbf16>, vector<8x32xbf16>, vector<16x32xf32> -> vector<16x32xf32>
    %127 = arith.addf %105, %126 : vector<16x32xf32>
    %128 = vector.broadcast %29 : vector<1x32xf32> to vector<16x32xf32>
    %129 = arith.addf %127, %128 : vector<16x32xf32>
    %c0_46 = arith.constant 0 : index
    %c0_47 = arith.constant 0 : index
    %c0_48 = arith.constant 0 : index
    %130 = vector.load %arg8[%c0_46, %c0_47, %c0_48] : memref<1x16x32xf32, #tpu.memory_space<vmem>>, vector<1x16x32xf32>
    %131 = vector.shape_cast %130 : vector<1x16x32xf32> to vector<16x32xf32>
    %132 = vector.shape_cast %129 : vector<16x32xf32> to vector<1x16x32xf32>
    tpu.vector_store %arg8[%c0_46, %c0_47, %c0_48], %132 {strides = array<i32>} : memref<1x16x32xf32, #tpu.memory_space<vmem>>, vector<1x16x32xf32>,
    return
  }
  func.func @transform_0(%arg0: i32) -> (i32, i32, i32) {
    %c0_i32 = arith.constant 0 : i32
    %c0_i32_0 = arith.constant 0 : i32
    %c0_i32_1 = arith.constant 0 : i32
    return %arg0, %c0_i32, %c0_i32_0 : i32, i32, i32
  }
  func.func @transform_1(%arg0: i32) -> (i32, i32) {
    %c0_i32 = arith.constant 0 : i32
    %c0_i32_0 = arith.constant 0 : i32
    %c0_i32_1 = arith.constant 0 : i32
    return %c0_i32, %c0_i32_0 : i32, i32
  }
  func.func @transform_2(%arg0: i32) -> (i32, i32) {
    %c0_i32 = arith.constant 0 : i32
    %c0_i32_0 = arith.constant 0 : i32
    %c0_i32_1 = arith.constant 0 : i32
    return %c0_i32, %c0_i32_0 : i32, i32
  }
  func.func @transform_3(%arg0: i32) -> (i32, i32) {
    %c0_i32 = arith.constant 0 : i32
    %c0_i32_0 = arith.constant 0 : i32
    %c0_i32_1 = arith.constant 0 : i32
    return %c0_i32, %c0_i32_0 : i32, i32
  }
  func.func @transform_4(%arg0: i32) -> (i32, i32) {
    %c0_i32 = arith.constant 0 : i32
    %c0_i32_0 = arith.constant 0 : i32
    %c0_i32_1 = arith.constant 0 : i32
    return %c0_i32, %c0_i32_0 : i32, i32
  }
  func.func @transform_5(%arg0: i32) -> (i32, i32) {
    %c0_i32 = arith.constant 0 : i32
    %c0_i32_0 = arith.constant 0 : i32
    %c0_i32_1 = arith.constant 0 : i32
    return %c0_i32, %c0_i32_0 : i32, i32
  }
  func.func @transform_6(%arg0: i32) -> (i32, i32, i32) {
    %c0_i32 = arith.constant 0 : i32
    %c0_i32_0 = arith.constant 0 : i32
    %c0_i32_1 = arith.constant 0 : i32
    return %arg0, %c0_i32, %c0_i32_0 : i32, i32, i32
  }
  func.func @transform_7(%arg0: i32) -> (i32, i32, i32) {
    %c0_i32 = arith.constant 0 : i32
    %c0_i32_0 = arith.constant 0 : i32
    %c0_i32_1 = arith.constant 0 : i32
    return %arg0, %c0_i32, %c0_i32_0 : i32, i32, i32
  }
}

</mosaic_0001>

<bundles_post_ra>
// kernel: tpu_custom_call.1
= control target key start
LH: loop header
LB: loop body
LE: loop exit
PB: predicated region body
PF: predicated region fallthrough
CT: control target
= control target key end

     0   :  { %s1775_s0 = inlined_call_operand.hbm [shape: f32[2,16,32], index: 0, kind: input, shape index: {}]   ;;  %s1776_s1 = inlined_call_operand.hbm [shape: f32[1,32], index: 1, kind: input, shape index: {}]   ;;  %s1777_s2 = inlined_call_operand.vmem [shape: f32[1,32], index: 2, kind: input, shape index: {}]   ;;  %s1778_s3 = inlined_call_operand.hbm [shape: bf16[32,96], index: 3, kind: input, shape index: {}]   ;;  %s1779_s4 = inlined_call_operand.hbm [shape: bf16[32,32], index: 4, kind: input, shape index: {}]   ;;  %s1780_s5 = inlined_call_operand.vmem [shape: f32[1,32], index: 5, kind: input, shape index: {}]   ;;  %s1781_s6 = inlined_call_operand.vmem [shape: f32[2,1,16], index: 6, kind: input, shape index: {}]   ;;  %s1782_s7 = inlined_call_operand.hbm [shape: f32[2,16,32], index: 7, kind: output, shape index: {}]  }
   0x1   :  { %1783 = sst [smem:[#allocation15_spill]] %s1776_s1 }
   0x2   :  { %12 = vsyncpa [#allocation3], 0 }
   0x3   :  { %14 = vsyncpa [#allocation3 + $0x1], 0 }
   0x4   :  { %15 = vsyncpa [#allocation6], 0 }
   0x5   :  { %16 = vsyncpa [#allocation9], 0 }
   0x6   :  { %17 = vsyncpa [#allocation4], 0 }
   0x7   :  { %19 = vsyncpa [#allocation4 + $0x1], 0  ;;  %s1520_s24 = smov 0   ;;  %s1522_s25 = smov 0  }
   0x8   :  { %s1524_s26 = smov 0   ;;  %s1526_s27 = smov 0  }
   0x9 LB: > { %s1541_s28 = sadd.s32 4294967295, %s1457_s27   ;;  %s1082_s29 = sadd.s32 4294967294, %s1457_s27   ;;  %s1457_s27 = sphi %s1526_s27, %s1795_s27   ;;  %s1453_s26 = sphi %s1524_s26, %s1794_s26   ;;  %s1449_s25 = sphi %s1522_s25, %s1793_s25   ;;  %s1445_s24 = sphi %s1520_s24, %s1792_s24  }
   0xa   : > { %p45_p0 = scmp.ne.s32.totalorder %s1449_s25, %s1445_s24  ;;  %p46_p1 = scmp.eq.s32.totalorder %s1541_s28, 0 }
   0xb   : > { %p200_p2 = scmp.eq.s32.totalorder %s1541_s28, 1  ;;  %p206_p3 = scmp.eq.s32.totalorder %s1082_s29, 1 }
   0xc   : > { %p1550_p4 = por %p46_p1, %p45_p0  ;;  %p1083_p5 = scmp.ge.s32.totalorder %s1457_s27, 1 }
   0xd   : > { %p1555_p6 = por %p206_p3, %p45_p0  ;;  %p213_p7 = scmp.lt.s32.totalorder %s1457_s27, 3 }
   0xe   : > { %s1786_s1 = sld [smem:[#allocation15_spill]]  ;;  %s1459_s13 = smov [#allocation5]  }
   0xf   : > { %p1563_p8 = pnand %p1083_p5, %p213_p7  ;;  %s227_s14 = sshll.u32 %s1459_s13, 4  ;;  %s228_s14 = int_to_ptr.vmem [resolvable:$true] %s227_s14 }
  0x10   : > { %s239_s17 = sshll.u32 %s1778_s3, 4  ;;  %s1460_s19 = smov [#allocation7]   ;;  %s240_s17 = int_to_ptr.hbm [resolvable:$true] %s239_s17 }
  0x11   : > { %p1143_p10 = pneg %p1563_p8  ;;  %s241_s20 = sshll.u32 %s1460_s19, 4  ;;  %s242_s20 = int_to_ptr.vmem [resolvable:$true] %s241_s20 }
  0x12   : > { %s1461_s21 = smov 64   ;;  %s1462_s22 = smov 4  }
  0x13   : > { %p1575_p11 = pnand %p1143_p10, %p46_p1  ;;  %s253_s9 = sshll.u32 %s1779_s4, 4  ;;  %s254_s9 = int_to_ptr.hbm [resolvable:$true] %s253_s9 }
  0x14   : > { %s225_s11 = sshll.u32 %s1786_s1, 4  ;;  %s1463_s10 = smov [#allocation8]   ;;  %s226_s11 = int_to_ptr.hbm [resolvable:$true] %s225_s11 }
  0x15   : > { %1146 = dma.hbm_to_vmem [thread:$0]  (!%p1575_p11), %s226_s11, 16, %s228_s14, [#allocation6]  }
  0x16   : > { %1149 = dma.hbm_to_vmem [thread:$0]  (!%p1575_p11), %s240_s17, 256, %s242_s20, [#allocation6], %s1461_s21, %s1461_s21, %s1462_s22  }
  0x17   : > { %s255_s13 = sshll.u32 %s1463_s10, 4  ;;  %s1589_s11 = sadd.s32 1, %s1457_s27   ;;  %s256_s13 = int_to_ptr.vmem [resolvable:$true] %s255_s13 }
  0x18   : > { %1152 = dma.hbm_to_vmem [thread:$0]  (!%p1575_p11), %s254_s9, 256, %s256_s13, [#allocation9], %s1461_s21, %s1461_s21, %s1462_s22  }
  0x19   : > { %s29_s14 = ssub.s32 %s1457_s27, %s1589_s11  ;;  %s32_s15 = sadd.s32 1, %s1453_s26 }
  0x1a   : > { %p30_p12 = scmp.eq.s32.totalorder %s29_s14, 0  ;;  %p39_p13 = scmp.ne.s32.totalorder %s1453_s26, %s1449_s25 }
  0x1b   : > { %p40_p0 = scmp.eq.s32.totalorder %s1457_s27, 0  ;;  %p1164_p3 = scmp.lt.s32.totalorder %s1457_s27, 2 }
  0x1c   : > { %s1599_s16 = scalar_select %p30_p12, %s1453_s26, %s32_s15  }
  0x1d   : > { %p41_p5 = por %p40_p0, %p39_p13  ;;  %p1603_p7 = por %p200_p2, %p39_p13 }
  0x1e   : > { %s272_s18 = sand.u32 1, %s1453_s26   ;;  %s1123_s19 = sshll.u32 %s1457_s27, 4 }
  0x1f   : > { %s1088_s20 = sshll.u32 %s272_s18, 4  ;;  %s281_s23 = scalar_lea.hbm %s1775_s0, %s1123_s19 }
  0x20   : > { %s282_s29 = sshll.u32 %s281_s23, 4  ;;  %s276_s9 = scalar_lea.vmem [#allocation2], %s1088_s20  ;;  %s283_s29 = int_to_ptr.hbm [resolvable:$true] %s282_s29 }
  0x21   : > { %s284_s10 = sshll.u32 %s276_s9, 4  ;;  %p1614_p10 = pnand %p1164_p3, %p41_p5  ;;  %s285_s10 = int_to_ptr.vmem [resolvable:$true] %s284_s10 }
  0x22   : > { %s273_s14 = scalar_lea.sflag [#allocation3], %s272_s18  ;;  %s1353_s15 = sshra.s32 %s283_s29, 4  ;;  %s1354_s15 = int_to_ptr.hbm [resolvable:$true] %s1353_s15 }
  0x23   : > { %s1355_s1 = scalar_lea.hbm %s1354_s15, 16  ;;  %p1357_p11 = pneg %p1614_p10 }
  0x24   : > { %p1356_p2 = scmp.ne.s32.totalorder %s1354_s15, %s1355_s1  ;;  %s1360_s21 = scalar_lea.hbm %s1775_s0, 32 }
  0x25   : > { %p1361_p0 = scmp.lt.s32.totalorder %s1354_s15, %s1775_s0  ;;  %p1362_p3 = scmp.lt.s32.totalorder %s1360_s21, %s1355_s1 }
  0x26   : > { %p1358_p12 = pnand %p1357_p11, %p1356_p2 }
  0x27   : > { %p1363_p5 = por %p1362_p3, %p1361_p0 }
  0x28   : > { %p1359_p13 = pneg %p1358_p12 }
  0x2a   : > { %p1364_p9 = pnand %p1363_p5, %p1359_p13 }
  0x2c   : > { %1367 = shalt.err (!%p1364_p9)
}
  0x2d   : > { %s1464_s18 = smov 128   ;;  %s1465_s9 = smov 8  }
  0x2e   : > { %1156 = dma.hbm_to_vmem [thread:$0]  (!%p1614_p10), %s283_s29, 256, %s285_s10, %s273_s14, %s1464_s18, %s1464_s18, %s1465_s9  }
  0x2f   : > { %302 = sbr.rel (%p1563_p8) target bundleno = 1563 (0x61b), region = 48  ;;  %s1631_s19 = sand.u32 (!%p1563_p8), 1, %s1449_s25  }
  0x30   : > { %s1092_s15 = sshll.u32 (!%p1563_p8), %s1631_s19, 4  ;;  %s305_s1 = scalar_lea.sflag (!%p1563_p8), [#allocation3], %s1631_s19 }
  0x31   : > { %s308_s20 = scalar_lea.vmem (!%p1563_p8), [#allocation2], %s1092_s15 }
  0x34   : > { %1428 = dma.done.wait (%p1550_p4), %s305_s1, 256  }
  0x35   : > { %1430 = vsyncadd (%p1550_p4), %s305_s1, 4294967040 }
  0x36   : > { %1432 = dma.done.wait (%p46_p1), [#allocation6], 272  }
  0x37   : > { %1434 = vsyncadd (%p46_p1), [#allocation6], 4294967024 }
  0x38   : > { %1436 = dma.done.wait (%p46_p1), [#allocation9], 256  }
  0x39   : > { %1438 = vsyncadd (%p46_p1), [#allocation9], 4294967040  ;;  %vm364_vm0 = vcmask 261120   ;;  %v362_v0 = vld [vmem:[%s308_s20] sm:$0xff]  ;;  %v363_v2 = vld [vmem:[%s308_s20 + $0x8] sm:$0xff]  ;;  %v1466_v4 = vmov 32.0  }
  0x3a   : > { %v365_v1 = vsel %vm364_vm0, %v362_v0, 0.0  ;;  %v368_v3 = vsel %vm364_vm0, %v363_v2, 0.0  ;;  %1225 = vrcp.f32 %v1466_v4  ;;  %v1125_v21 = vld [vmem:[#allocation7 + $0x8] sm:$0xff]  ;;  %v1124_v23 = vld [vmem:[#allocation7] sm:$0xff]  ;;  %v1222_v42 = vld [vmem:[#allocation5] ss:$0 sm:$0xff] }
  0x3b   : > { %366 = vadd.xlane.f32.xlu0 %v365_v1  ;;  %454 = vmatpush.bf16.msra.mxu0 %v1125_v21  ;;  %v1223_v47 = vld [vmem:[%s1777_s2] ss:$0 sm:$0xff]  ;;  %s1467_s29 = smov 64   ;;  %s1468_s10 = smov 96   ;;  %vm481_vm8 = vcmask 64512   ;;  %vm502_vm9 = vcmask 130048  }
  0x3c   : > { %s1469_s13 = smov 120   ;;  %s1470_s14 = smov 80   ;;  %vm674_vm10 = vcmask 1043456  }
  0x3d   : > { %s1471_s21 = smov 112   ;;  %p358_p1 = scmp.lt.s32.totalorder %s1541_s28, 1 }
  0x3e   : > { %s1472_s1 = smov 72   ;;  %s1473_s20 = smov 88  }
  0x3f   : > { %455 = vmatpush.bf16.msra.mxu0 %v1124_v23  ;;  %s359_s22 = scalar_select %p358_p1, %s1541_s28, 1 }
  0x40   : > { %v1226_v5 = vpop.eup %1225  ;;  %s1474_s30 = smov 56   ;;  %s1475_s12 = smov 104  }
  0x41   : > { %v372_v6 = vmul.f32 32.0, %v1226_v5  ;;  %vm376_vm1 = vweird.f32 %v1226_v5  ;;  %s360_s9 = scalar_lea.vmem %s1781_s6, %s359_s22 }
  0x42   : > { %v469_v62 = vld [vmem:[%s360_s9] sm:$0x1]  ;;  %s357_s9 = scalar_lea.vmem [#allocation10], %s1092_s15 }
  0x43   : > { %369 = vadd.xlane.f32.xlu0 %v368_v3  ;;  %v373_v7 = vsub.f32 1.0, %v372_v6  ;;  %v470_v63 = vmul.f32 -1e+30, %v469_v62 }
  0x45   : > { %v374_v8 = vmul.f32 %v1226_v5, %v373_v7  ;;  %v464_v7 = vld [vmem:[#allocation8] sm:$0xf] }
  0x47   : > { %v375_v9 = vadd.f32 %v1226_v5, %v374_v8  ;;  %v696_v8 = vsel %vm674_vm10, %v464_v7, 0 }
  0x49   : > { %v377_v10 = vsel %vm376_vm1, %v1226_v5, %v375_v9 }
  0xae   : > { %v367_v11 = vpop.xlane.xlu0 %366 }
  0xaf   : > { %v378_v12 = vmul.f32 %v377_v10, %v367_v11 }
  0xb1   : > { %v380_v13 = vsub.f32 %v362_v0, %v378_v12  ;;  %v1672_v0 = vperm.slane %v470_v63, 0 }
  0xb3   : > { %v382_v14 = vmul.f32 %v380_v13, %v380_v13 }
  0xb5   : > { %v384_v15 = vsel %vm364_vm0, %v382_v14, 0.0 }
  0xb6   : > { %385 = vadd.xlane.f32.xlu1 %v384_v15  ;;  %v370_v16 = vpop.xlane.xlu0 %369 }
  0xb7   : > { %v379_v17 = vmul.f32 %v377_v10, %v370_v16 }
  0xb9   : > { %v381_v18 = vsub.f32 %v363_v2, %v379_v17 }
  0xbb   : > { %v383_v19 = vmul.f32 %v381_v18, %v381_v18 }
  0xbd   : > { %v387_v20 = vsel %vm364_vm0, %v383_v19, 0.0 }
  0xbe   : > { %388 = vadd.xlane.f32.xlu1 %v387_v20 }
 0x129   : > { %v386_v22 = vpop.xlane.xlu1 %385 }
 0x12a   : > { %v390_v24 = vmul.f32 %v386_v22, %v377_v10 }
 0x12c   : > { %v392_v25 = vadd.f32 1e-05, %v390_v24 }
 0x12e   : > { %1227 = vrsqrt.f32 %v392_v25  ;;  %vm400_vm3 = vweird.f32 %v392_v25 }
 0x131   : > { %v389_v26 = vpop.xlane.xlu1 %388 }
 0x132   : > { %v391_v27 = vmul.f32 %v389_v26, %v377_v10 }
 0x134   : > { %v1228_v28 = vpop.eup %1227  ;;  %v393_v29 = vadd.f32 1e-05, %v391_v27 }
 0x135   : > { %v395_v30 = vmul.f32 %v1228_v28, %v392_v25  ;;  %vm401_vm2 = vweird.f32 %v1228_v28 }
 0x136   : > { %1229 = vrsqrt.f32 %v393_v29  ;;  %vm402_vm4 = vmor %vm400_vm3, %vm401_vm2  ;;  %vm410_vm6 = vweird.f32 %v393_v29 }
 0x137   : > { %v396_v31 = vmul.f32 %v1228_v28, %v395_v30 }
 0x139   : > { %v397_v32 = vmul.f32 0.5, %v396_v31 }
 0x13b   : > { %v398_v33 = vsub.f32 1.5, %v397_v32 }
 0x13c   : > { %v1230_v34 = vpop.eup %1229 }
 0x13d   : > { %v399_v35 = vmul.f32 %v1228_v28, %v398_v33  ;;  %v405_v36 = vmul.f32 %v1230_v34, %v393_v29  ;;  %vm411_vm5 = vweird.f32 %v1230_v34 }
 0x13e   : > { %vm412_vm7 = vmor %vm410_vm6, %vm411_vm5 }
 0x13f   : > { %v406_v37 = vmul.f32 %v1230_v34, %v405_v36  ;;  %v403_v38 = vsel %vm402_vm4, %v1228_v28, %v399_v35 }
 0x140   : > { %v414_v41 = vmul.f32 %v403_v38, %v380_v13 }
 0x141   : > { %v407_v39 = vmul.f32 0.5, %v406_v37 }
 0x142   : > { %v420_v46 = vmul.f32 %v1222_v42, %v414_v41 }
 0x143   : > { %v408_v40 = vsub.f32 1.5, %v407_v39 }
 0x144   : > { %v426_v49 = vadd.f32 %v1223_v47, %v420_v46 }
 0x145   : > { %v409_v43 = vmul.f32 %v1230_v34, %v408_v40 }
 0x147   : > { %v413_v44 = vsel %vm412_vm7, %v1230_v34, %v409_v43 }
 0x148   : > { %v415_v45 = vmul.f32 %v413_v44, %v381_v18 }
 0x14a   : > { %v421_v48 = vmul.f32 %v1222_v42, %v415_v45 }
 0x14c   : > { %v427_v50 = vadd.f32 %v1223_v47, %v421_v48 }
 0x14e   : > { %v428_v51 = vpack.c.bf16 %v427_v50, %v426_v49 }
 0x150   : > { %1105 = vmatmul.msk.bf16.vlgmr.msra.gmra.mxu0 %vm364_vm0, %v428_v51 }
 0x1cd   : > { %v457_v52 = vpop.f32.mrf.mxu0 }
 0x1ce   : > { %v462_v53 = vpack.c.bf16 %v457_v52, %v457_v52 }
 0x1d0   : > { %v476_v56 = vunpack.c.l.b16 %v462_v53 }
 0x1d5   : > { %v459_v54 = vpop.f32.mrf.mxu0 }
 0x1d6   : > { %v463_v55 = vpack.c.bf16 %v459_v54, %v459_v54 }
 0x1d8   : > { %v477_v57 = vunpack.c.l.b16 %v463_v55 }
 0x1da   : > { %v1657_v58 = vpack.c.b16 %v477_v57, %v476_v56 }
 0x1dc   : > { %552 = vrot.lane.b32.xlu1 %v1657_v58, %s1467_s29  ;;  %479 = vrot.lane.b32.xlu2 %v1657_v58, %s1468_s10  ;;  %s1476_s29 = smov 40   ;;  %s1477_s10 = smov 48  }
 0x1e4   : > { %575 = vrot.lane.b32.xlu1 %v1657_v58, %s1469_s13 }
 0x1ec   : > { %714 = vrot.lane.b32.xlu1 %v1657_v58, %s1470_s14 }
 0x1f4   : > { %712 = vrot.lane.b32.xlu1 %v1657_v58, %s1471_s21  ;;  %s1126_s21 = sshll.u32 %s1541_s28, 4  ;;  %s956_s28 = scalar_lea.sflag [#allocation4], %s1631_s19 }
 0x1f5   : > { %s967_s18 = scalar_lea.hbm %s1782_s7, %s1126_s21 }
 0x236   : > { %v480_v59 = vpop.permute.xlu2 %479 }
 0x237   : > { %v486_v60 = vsel %vm481_vm8, %v480_v59, 0 }
 0x238   : > { %495 = vmatpush.bf16.xpose.msra.mxu1 %v486_v60 }
 0x23f   : > { %1106 = vmatmul.msk.bf16.vlgmr.msra.gmra.mxu1 %vm481_vm8, %v1657_v58 }
 0x240   : > { %705 = vmatpush.bf16.msrb.mxu1 %v696_v8 }
 0x24e   : > { %v553_v61 = vpop.permute.xlu1 %552 }
 0x24f   : > { %565 = vmatpush.bf16.msra.mxu2 %v553_v61 }
 0x256   : > { %v576_v19 = vpop.permute.xlu1 %575 }
 0x25e   : > { %v715_v24 = vpop.permute.xlu1 %714 }
 0x25f   : > { %v720_v27 = vsel %vm481_vm8, %v715_v24, 0 }
 0x266   : > { %v713_v28 = vpop.permute.xlu1 %712 }
 0x2bc   : > { %v497_v1 = vpop.f32.mrf.mxu1 }
 0x2bd   : > { %v498_v2 = vadd.f32 %v497_v1, %v1672_v0 }
 0x2bf   : > { %v503_v3 = vsel %vm502_vm9, %v498_v2, -inf }
 0x2c0   : > { %504 = vmax.xlane.f32.xlu2 %v503_v3 }
 0x2c4   : > { %v499_v4 = vpop.f32.mrf.mxu1 }
 0x2c5   : > { %v500_v5 = vadd.f32 %v499_v4, %v1672_v0 }
 0x2c7   : > { %v506_v6 = vsel %vm502_vm9, %v500_v5, -inf }
 0x2c8   : > { %507 = vmax.xlane.f32.xlu0 %v506_v6 }
 0x2d8   : > { %832 = vrot.lane.b32.xlu2 %v1657_v58, %s1472_s1  ;;  %s968_s1 = sshll.u32 %s357_s9, 4  ;;  %s969_s1 = int_to_ptr.vmem [resolvable:$true] %s968_s1 }
 0x2dc   : > { %577 = vrot.lane.b32.xlu0 %v1657_v58, %s1473_s20  ;;  %s970_s20 = sshll.u32 %s967_s18, 4  ;;  %s971_s20 = int_to_ptr.hbm [resolvable:$true] %s970_s20 }
 0x2e0   : > { %648 = vrot.lane.b32.xlu2 %v1657_v58, %s1474_s30  ;;  %s1397_s30 = sshra.s32 %s971_s20, 4  ;;  %s1398_s30 = int_to_ptr.hbm [resolvable:$true] %s1397_s30 }
 0x2e1   : > { %p1404_p10 = scmp.lt.s32.totalorder %s1398_s30, %s1782_s7 }
 0x333   : > { %v505_v9 = vpop.xlane.xlu2 %504 }
 0x334   : > { %v509_v10 = vsub.f32 %v498_v2, %v505_v9 }
 0x336   : > { %v511_v11 = vmul.f32 1.442695, %v509_v10 }
 0x338   : > { %1231 = vpow2.f32 %v511_v11 }
 0x33b   : > { %v508_v12 = vpop.xlane.xlu0 %507  ;;  %v833_v13 = vpop.permute.xlu2 %832 }
 0x33c   : > { %v510_v14 = vsub.f32 %v500_v5, %v508_v12  ;;  %v838_v15 = vsel %vm481_vm8, %v833_v13, 0 }
 0x33d   : > { %847 = vmatpush.bf16.xpose.msra.mxu1 %v838_v15 }
 0x33e   : > { %v1232_v16 = vpop.eup %1231  ;;  %v513_v17 = vmul.f32 1.442695, %v510_v14 }
 0x33f   : > { %v515_v18 = vsel %vm502_vm9, %v1232_v16, 0.0 }
 0x340   : > { %1233 = vpow2.f32 %v513_v17  ;;  %516 = vadd.xlane.f32.xlu0 %v515_v18 }
 0x343   : > { %v649_v20 = vpop.permute.xlu2 %648 }
 0x344   : > { %661 = vmatpush.bf16.msrb.mxu2 %v649_v20 }
 0x346   : > { %v1234_v21 = vpop.eup %1233 }
 0x347   : > { %v518_v22 = vsel %vm502_vm9, %v1234_v21, 0.0  ;;  %v551_v23 = vpack.c.bf16 %v1234_v21, %v1232_v16 }
 0x348   : > { %519 = vadd.xlane.f32.xlu0 %v518_v22 }
 0x349   : > { %1107 = vmatmul.msk.bf16.vlgmr.msra.gmra.mxu2 %vm502_vm9, %v551_v23 }
 0x34e   : > { %v578_v25 = vpop.permute.xlu0 %577 }
 0x34f   : > { %v583_v26 = vsel %vm481_vm8, %v578_v25, 0 }
 0x350   : > { %592 = vmatpush.bf16.xpose.msra.mxu3 %v583_v26 }
 0x357   : > { %1108 = vmatmul.msk.bf16.vlgmr.msra.gmra.mxu3 %vm481_vm8, %v576_v19 }
 0x358   : > { %729 = vmatpush.bf16.xpose.msrb.mxu3 %v720_v27 }
 0x35c   : > { %830 = vrot.lane.b32.xlu0 %v1657_v58, %s1475_s12  ;;  %s1399_s12 = scalar_lea.hbm %s1398_s30, 16 }
 0x35d   : > { %p1400_p4 = scmp.ne.s32.totalorder %s1398_s30, %s1399_s12 }
 0x35f   : > { %p1401_p8 = pnand %p1400_p4, %p1603_p7 }
 0x361   : > { %p1402_p9 = pneg %p1401_p8 }
 0x367   : > { %1112 = vmatmul.msk.bf16.vlgmr.msrb.gmra.mxu3 %vm481_vm8, %v713_v28 }
 0x3b3   : > { %v517_v29 = vpop.xlane.xlu0 %516 }
 0x3b4   : > { %1235 = vrcp.f32 %v517_v29  ;;  %vm526_vm13 = vweird.f32 %v517_v29  ;;  %v532_v42 = vand.u32 2147483648, %v517_v29  ;;  %v530_v44 = vand.u32 2147483647, %v517_v29 }
 0x3b6   : > { %v533_v48 = vor.u32 1.1754944e-38, %v532_v42  ;;  %vm531_vm2 = vcmp.eq.f32.partialorder %v530_v44, 8.507059e+37 }
 0x3ba   : > { %v1236_v31 = vpop.eup %1235 }
 0x3bb   : > { %v520_v30 = vpop.xlane.xlu0 %519  ;;  %v522_v32 = vmul.f32 %v1236_v31, %v517_v29  ;;  %vm527_vm11 = vweird.f32 %v1236_v31 }
 0x3bc   : > { %1237 = vrcp.f32 %v520_v30  ;;  %v547_v43 = vand.u32 2147483648, %v520_v30  ;;  %vm528_vm14 = vmor %vm526_vm13, %vm527_vm11  ;;  %vm541_vm15 = vweird.f32 %v520_v30  ;;  %v545_v45 = vand.u32 2147483647, %v520_v30 }
 0x3bd   : > { %v523_v35 = vsub.f32 1.0, %v522_v32 }
 0x3be   : > { %v548_v49 = vor.u32 1.1754944e-38, %v547_v43  ;;  %vm546_vm3 = vcmp.eq.f32.partialorder %v545_v45, 8.507059e+37 }
 0x3bf   : > { %v524_v37 = vmul.f32 %v1236_v31, %v523_v35 }
 0x3c1   : > { %v525_v40 = vadd.f32 %v1236_v31, %v524_v37 }
 0x3c2   : > { %v1238_v33 = vpop.eup %1237 }
 0x3c3   : > { %v537_v34 = vmul.f32 %v1238_v33, %v520_v30  ;;  %vm542_vm12 = vweird.f32 %v1238_v33  ;;  %v529_v46 = vsel %vm528_vm14, %v1236_v31, %v525_v40  ;;  %v465_v40 = vld [vmem:[#allocation8 + $0x4] sm:$0xf] }
 0x3c4   : > { %vm543_vm1 = vmor %vm541_vm15, %vm542_vm12  ;;  %v534_v50 = vsel %vm531_vm2, %v533_v48, %v529_v46  ;;  %v676_v42 = vsel %vm674_vm10, %v465_v40, 0 }
 0x3c5   : > { %v538_v36 = vsub.f32 1.0, %v537_v34  ;;  %685 = vmatpush.bf16.msrb.mxu0 %v676_v42 }
 0x3c7   : > { %v539_v38 = vmul.f32 %v1238_v33, %v538_v36 }
 0x3c9   : > { %v540_v41 = vadd.f32 %v1238_v33, %v539_v38 }
 0x3cb   : > { %v544_v47 = vsel %vm543_vm1, %v1238_v33, %v540_v41 }
 0x3cc   : > { %v567_v39 = vpop.f32.mrf.mxu2  ;;  %v549_v51 = vsel %vm546_vm3, %v548_v49, %v544_v47 }
 0x3cd   : > { %v572_v53 = vmul.f32 %v567_v39, %v534_v50 }
 0x3ce   : > { %v831_v63 = vpop.permute.xlu0 %830 }
 0x3d4   : > { %v569_v52 = vpop.f32.mrf.mxu2 }
 0x3d5   : > { %v573_v54 = vmul.f32 %v569_v52, %v549_v51 }
 0x3d7   : > { %v574_v55 = vpack.c.bf16 %v573_v54, %v572_v53 }
 0x3d9   : > { %1111 = vmatmul.msk.bf16.vlgmr.msrb.gmra.mxu1 %vm481_vm8, %v574_v55 }
 0x3da   : > { %v594_v56 = vpop.f32.mrf.mxu3 }
 0x3db   : > { %v595_v57 = vadd.f32 %v594_v56, %v1672_v0 }
 0x3dd   : > { %v599_v59 = vsel %vm502_vm9, %v595_v57, -inf }
 0x3de   : > { %600 = vmax.xlane.f32.xlu1 %v599_v59 }
 0x3e2   : > { %v596_v60 = vpop.f32.mrf.mxu3 }
 0x3e3   : > { %v597_v61 = vadd.f32 %v596_v60, %v1672_v0 }
 0x3e5   : > { %v602_v62 = vsel %vm502_vm9, %v597_v61, -inf }
 0x3e6   : > { %603 = vmax.xlane.f32.xlu0 %v602_v62 }
 0x3e9   : > { %1115 = vmatmul.msk.bf16.vlgmr.msra.gmra.mxu1 %vm481_vm8, %v831_v63 }
 0x3ea   : > { %v731_v1 = vpop.f32.mrf.mxu3 }
 0x3eb   : > { %v732_v2 = vadd.f32 %v731_v1, %v1672_v0 }
 0x3ed   : > { %v736_v3 = vsel %vm502_vm9, %v732_v2, -inf }
 0x3ee   : > { %737 = vmax.xlane.f32.xlu0 %v736_v3 }
 0x3f2   : > { %v733_v22 = vpop.f32.mrf.mxu3 }
 0x3f3   : > { %v734_v24 = vadd.f32 %v733_v22, %v1672_v0 }
 0x3f5   : > { %v739_v25 = vsel %vm502_vm9, %v734_v24, -inf }
 0x402   : > { %903 = vrot.lane.b32.xlu0 %v1657_v58, %s1476_s29 }
 0x451   : > { %v601_v4 = vpop.xlane.xlu1 %600 }
 0x452   : > { %v605_v5 = vsub.f32 %v595_v57, %v601_v4 }
 0x454   : > { %v607_v7 = vmul.f32 1.442695, %v605_v5 }
 0x456   : > { %v1700_v6 = vpop.f32.mrf.mxu1  ;;  %1239 = vpow2.f32 %v607_v7 }
 0x459   : > { %v604_v8 = vpop.xlane.xlu0 %603 }
 0x45a   : > { %v606_v9 = vsub.f32 %v597_v61, %v604_v8 }
 0x45c   : > { %v609_v10 = vmul.f32 1.442695, %v606_v9  ;;  %v1240_v12 = vpop.eup %1239 }
 0x45d   : > { %v611_v26 = vsel %vm502_vm9, %v1240_v12, 0.0 }
 0x45e   : > { %1241 = vpow2.f32 %v609_v10  ;;  %v1702_v11 = vpop.f32.mrf.mxu1 }
 0x461   : > { %v738_v18 = vpop.xlane.xlu0 %737 }
 0x462   : > { %v742_v28 = vsub.f32 %v732_v2, %v738_v18  ;;  %v466_v18 = vld [vmem:[#allocation8 + $0x8] sm:$0xf] }
 0x464   : > { %v1242_v13 = vpop.eup %1241  ;;  %v744_v29 = vmul.f32 1.442695, %v742_v28 }
 0x465   : > { %v647_v14 = vpack.c.bf16 %v1242_v13, %v1240_v12  ;;  %v614_v27 = vsel %vm502_vm9, %v1242_v13, 0.0 }
 0x466   : > { %v849_v15 = vpop.f32.mrf.mxu1  ;;  %1243 = vpow2.f32 %v744_v29 }
 0x467   : > { %v850_v16 = vadd.f32 %v849_v15, %v1672_v0  ;;  %1109 = vmatmul.msk.bf16.vlgmr.msrb.gmra.mxu2 %vm502_vm9, %v647_v14 }
 0x469   : > { %v854_v17 = vsel %vm502_vm9, %v850_v16, -inf }
 0x46a   : > { %855 = vmax.xlane.f32.xlu2 %v854_v17  ;;  %v467_v17 = vld [vmem:[#allocation8 + $0xc] sm:$0xf] }
 0x46c   : > { %v1244_v30 = vpop.eup %1243 }
 0x46d   : > { %v748_v31 = vsel %vm502_vm9, %v1244_v30, 0.0 }
 0x46e   : > { %v851_v19 = vpop.f32.mrf.mxu1 }
 0x46f   : > { %v852_v20 = vadd.f32 %v851_v19, %v1672_v0  ;;  %v930_v19 = vsel %vm674_vm10, %v467_v17, 0 }
 0x471   : > { %v857_v21 = vsel %vm502_vm9, %v852_v20, -inf }
 0x472   : > { %858 = vmax.xlane.f32.xlu1 %v857_v21 }
 0x474   : > { %v904_v23 = vpop.permute.xlu0 %903 }
 0x475   : > { %916 = vmatpush.bf16.msra.mxu3 %v904_v23 }
 0x47a   : > { %740 = vmax.xlane.f32.xlu1 %v739_v25 }
 0x482   : > { %612 = vadd.xlane.f32.xlu1 %v611_v26  ;;  %785 = vrot.lane.b32.xlu2 %v1657_v58, %s1477_s10  ;;  %s1403_s10 = scalar_lea.hbm %s1782_s7, 32 }
 0x483   : > { %p1405_p2 = scmp.lt.s32.totalorder %s1403_s10, %s1399_s12 }
 0x485   : > { %p1406_p11 = por %p1405_p2, %p1404_p10 }
 0x487   : > { %p1407_p12 = pnand %p1406_p11, %p1402_p9 }
 0x48a   : > { %615 = vadd.xlane.f32.xlu1 %v614_v27 }
 0x4ab   : > { %749 = vadd.xlane.f32.xlu2 %v748_v31 }
 0x4dd   : > { %v856_v0 = vpop.xlane.xlu2 %855 }
 0x4de   : > { %v860_v32 = vsub.f32 %v850_v16, %v856_v0 }
 0x4e0   : > { %v862_v33 = vmul.f32 1.442695, %v860_v32 }
 0x4e2   : > { %1245 = vpow2.f32 %v862_v33 }
 0x4e5   : > { %v859_v34 = vpop.xlane.xlu1 %858  ;;  %v786_v35 = vpop.permute.xlu2 %785 }
 0x4e6   : > { %v861_v36 = vsub.f32 %v852_v20, %v859_v34  ;;  %798 = vmatpush.bf16.msra.mxu2 %v786_v35  ;;  %v812_v20 = vsel %vm674_vm10, %v466_v18, 0 }
 0x4e7   : > { %821 = vmatpush.bf16.msra.mxu0 %v812_v20 }
 0x4e8   : > { %v1246_v37 = vpop.eup %1245  ;;  %v864_v58 = vmul.f32 1.442695, %v861_v36 }
 0x4e9   : > { %v866_v38 = vsel %vm502_vm9, %v1246_v37, 0.0 }
 0x4ea   : > { %1247 = vpow2.f32 %v864_v58  ;;  %867 = vadd.xlane.f32.xlu0 %v866_v38  ;;  %v663_v57 = vpop.f32.mrf.mxu2  ;;  %939 = vmatpush.bf16.msrb.mxu2 %v930_v19  ;;  %v1224_v19 = vld [vmem:[%s1780_s5] ss:$0 sm:$0xff] }
 0x4ed   : > { %v741_v39 = vpop.xlane.xlu1 %740 }
 0x4ee   : > { %v743_v41 = vsub.f32 %v734_v24, %v741_v39 }
 0x4f0   : > { %v1248_v43 = vpop.eup %1247  ;;  %v746_v44 = vmul.f32 1.442695, %v743_v41 }
 0x4f1   : > { %v902_v45 = vpack.c.bf16 %v1248_v43, %v1246_v37  ;;  %v869_v46 = vsel %vm502_vm9, %v1248_v43, 0.0 }
 0x4f2   : > { %1249 = vpow2.f32 %v746_v44  ;;  %870 = vadd.xlane.f32.xlu1 %v869_v46  ;;  %v665_v12 = vpop.f32.mrf.mxu2 }
 0x4f3   : > { %1116 = vmatmul.msk.bf16.vlgmr.msra.gmra.mxu3 %vm502_vm9, %v902_v45 }
 0x4f5   : > { %v613_v47 = vpop.xlane.xlu1 %612 }
 0x4f6   : > { %1251 = vrcp.f32 %v613_v47  ;;  %v628_v61 = vand.u32 2147483648, %v613_v47  ;;  %vm622_vm5 = vweird.f32 %v613_v47  ;;  %v626_v62 = vand.u32 2147483647, %v613_v47 }
 0x4f8   : > { %v1250_v48 = vpop.eup %1249  ;;  %v629_v5 = vor.u32 1.1754944e-38, %v628_v61 }
 0x4f9   : > { %v784_v49 = vpack.c.bf16 %v1250_v48, %v1244_v30  ;;  %v751_v50 = vsel %vm502_vm9, %v1250_v48, 0.0 }
 0x4fa   : > { %752 = vadd.xlane.f32.xlu1 %v751_v50 }
 0x4fb   : > { %1113 = vmatmul.msk.bf16.vlgmr.msra.gmra.mxu2 %vm502_vm9, %v784_v49  ;;  %vm627_vm9 = vcmp.eq.f32.partialorder %v626_v62, 8.507059e+37 }
 0x4fc   : > { %v1252_v51 = vpop.eup %1251 }
 0x4fd   : > { %v618_v52 = vmul.f32 %v1252_v51, %v613_v47  ;;  %v616_v53 = vpop.xlane.xlu1 %615  ;;  %vm623_vm4 = vweird.f32 %v1252_v51 }
 0x4fe   : > { %1253 = vrcp.f32 %v616_v53  ;;  %vm624_vm6 = vmor %vm622_vm5, %vm623_vm4  ;;  %v643_v1 = vand.u32 2147483648, %v616_v53  ;;  %v641_v4 = vand.u32 2147483647, %v616_v53  ;;  %vm637_vm11 = vweird.f32 %v616_v53 }
 0x4ff   : > { %v619_v54 = vsub.f32 1.0, %v618_v52 }
 0x500   : > { %v644_v8 = vor.u32 1.1754944e-38, %v643_v1  ;;  %vm642_vm13 = vcmp.eq.f32.partialorder %v641_v4, 8.507059e+37 }
 0x501   : > { %v620_v55 = vmul.f32 %v1252_v51, %v619_v54 }
 0x503   : > { %v621_v59 = vadd.f32 %v1252_v51, %v620_v55 }
 0x504   : > { %v1254_v56 = vpop.eup %1253 }
 0x505   : > { %v633_v60 = vmul.f32 %v1254_v56, %v616_v53  ;;  %v625_v2 = vsel %vm624_vm6, %v1252_v51, %v621_v59  ;;  %vm638_vm7 = vweird.f32 %v1254_v56 }
 0x506   : > { %vm639_vm12 = vmor %vm637_vm11, %vm638_vm7  ;;  %v630_v9 = vsel %vm627_vm9, %v629_v5, %v625_v2 }
 0x507   : > { %v634_v63 = vsub.f32 1.0, %v633_v60  ;;  %v668_v14 = vmul.f32 %v663_v57, %v630_v9 }
 0x509   : > { %v635_v3 = vmul.f32 %v1254_v56, %v634_v63 }
 0x50b   : > { %v636_v7 = vadd.f32 %v1254_v56, %v635_v3 }
 0x50d   : > { %v640_v10 = vsel %vm639_vm12, %v1254_v56, %v636_v7 }
 0x50e   : > { %v645_v13 = vsel %vm642_vm13, %v644_v8, %v640_v10 }
 0x50f   : > { %v669_v15 = vmul.f32 %v665_v12, %v645_v13 }
 0x511   : > { %v670_v16 = vpack.c.bf16 %v669_v15, %v668_v14 }
 0x513   : > { %1110 = vmatmul.msk.bf16.vlgmr.msrb.gmra.mxu0 %vm481_vm8, %v670_v16 }
 0x51e   : > { %v1724_v23 = vpop.xlane.xlu2 %749 }
 0x51f   : > { %vm759_vm9 = vweird.f32 %v1724_v23  ;;  %v765_v59 = vand.u32 2147483648, %v1724_v23  ;;  %v763_v61 = vand.u32 2147483647, %v1724_v23 }
 0x521   : > { %v766_v3 = vor.u32 1.1754944e-38, %v765_v59 }
 0x55d   : > { %v868_v21 = vpop.xlane.xlu0 %867 }
 0x55e   : > { %1255 = vrcp.f32 %v868_v21  ;;  %vm877_vm15 = vweird.f32 %v868_v21  ;;  %v883_v40 = vand.u32 2147483648, %v868_v21  ;;  %v881_v42 = vand.u32 2147483647, %v868_v21 }
 0x560   : > { %v884_v48 = vor.u32 1.1754944e-38, %v883_v40  ;;  %vm882_vm4 = vcmp.eq.f32.partialorder %v881_v42, 8.507059e+37 }
 0x564   : > { %v1256_v24 = vpop.eup %1255 }
 0x565   : > { %v871_v22 = vpop.xlane.xlu1 %870  ;;  %v873_v25 = vmul.f32 %v1256_v24, %v868_v21  ;;  %vm878_vm10 = vweird.f32 %v1256_v24 }
 0x566   : > { %1257 = vrcp.f32 %v871_v22  ;;  %v898_v41 = vand.u32 2147483648, %v871_v22  ;;  %vm879_vm1 = vmor %vm877_vm15, %vm878_vm10  ;;  %vm892_vm2 = vweird.f32 %v871_v22  ;;  %v896_v43 = vand.u32 2147483647, %v871_v22 }
 0x567   : > { %1259 = vrcp.f32 %v1724_v23  ;;  %v874_v30 = vsub.f32 1.0, %v873_v25  ;;  %vm764_vm10 = vcmp.eq.f32.partialorder %v763_v61, 8.507059e+37 }
 0x568   : > { %v899_v49 = vor.u32 1.1754944e-38, %v898_v41  ;;  %vm897_vm5 = vcmp.eq.f32.partialorder %v896_v43, 8.507059e+37 }
 0x569   : > { %v875_v32 = vmul.f32 %v1256_v24, %v874_v30 }
 0x56b   : > { %v876_v38 = vadd.f32 %v1256_v24, %v875_v32 }
 0x56c   : > { %v1258_v26 = vpop.eup %1257 }
 0x56d   : > { %v888_v27 = vmul.f32 %v1258_v26, %v871_v22  ;;  %v753_v28 = vpop.xlane.xlu1 %752  ;;  %v1260_v29 = vpop.eup %1259  ;;  %vm893_vm14 = vweird.f32 %v1258_v26  ;;  %v880_v46 = vsel %vm879_vm1, %v1256_v24, %v876_v38 }
 0x56e   : > { %1261 = vrcp.f32 %v753_v28  ;;  %v755_v0 = vmul.f32 %v1260_v29, %v1724_v23  ;;  %vm894_vm3 = vmor %vm892_vm2, %vm893_vm14  ;;  %v885_v50 = vsel %vm882_vm4, %v884_v48, %v880_v46  ;;  %vm760_vm6 = vweird.f32 %v1260_v29 }
 0x56f   : > { %v889_v31 = vsub.f32 1.0, %v888_v27  ;;  %v780_v60 = vand.u32 2147483648, %v753_v28  ;;  %vm774_vm11 = vweird.f32 %v753_v28  ;;  %vm761_vm12 = vmor %vm759_vm9, %vm760_vm6  ;;  %v778_v63 = vand.u32 2147483647, %v753_v28 }
 0x570   : > { %v756_v36 = vsub.f32 1.0, %v755_v0 }
 0x571   : > { %v890_v33 = vmul.f32 %v1258_v26, %v889_v31  ;;  %v781_v4 = vor.u32 1.1754944e-38, %v780_v60  ;;  %vm779_vm14 = vcmp.eq.f32.partialorder %v778_v63, 8.507059e+37 }
 0x572   : > { %v757_v44 = vmul.f32 %v1260_v29, %v756_v36 }
 0x573   : > { %v891_v39 = vadd.f32 %v1258_v26, %v890_v33 }
 0x574   : > { %v1262_v34 = vpop.eup %1261  ;;  %v758_v51 = vadd.f32 %v1260_v29, %v757_v44 }
 0x575   : > { %v770_v35 = vmul.f32 %v1262_v34, %v753_v28  ;;  %v895_v47 = vsel %vm894_vm3, %v1258_v26, %v891_v39  ;;  %vm775_vm7 = vweird.f32 %v1262_v34 }
 0x576   : > { %v918_v37 = vpop.f32.mrf.mxu3  ;;  %v900_v53 = vsel %vm897_vm5, %v899_v49, %v895_v47  ;;  %vm776_vm13 = vmor %vm774_vm11, %vm775_vm7  ;;  %v762_v1 = vsel %vm761_vm12, %v1260_v29, %v758_v51 }
 0x577   : > { %v771_v58 = vsub.f32 1.0, %v770_v35  ;;  %v923_v55 = vmul.f32 %v918_v37, %v885_v50  ;;  %v767_v5 = vsel %vm764_vm10, %v766_v3, %v762_v1 }
 0x579   : > { %v772_v45 = vmul.f32 %v1262_v34, %v771_v58 }
 0x57b   : > { %v773_v57 = vadd.f32 %v1262_v34, %v772_v45 }
 0x57d   : > { %v777_v2 = vsel %vm776_vm13, %v1262_v34, %v773_v57 }
 0x57e   : > { %v800_v52 = vpop.f32.mrf.mxu2  ;;  %v920_v54 = vpop.f32.mrf.mxu3  ;;  %v782_v7 = vsel %vm779_vm14, %v781_v4, %v777_v2 }
 0x57f   : > { %v924_v56 = vmul.f32 %v920_v54, %v900_v53  ;;  %v805_v9 = vmul.f32 %v800_v52, %v767_v5 }
 0x581   : > { %v925_v62 = vpack.c.bf16 %v924_v56, %v923_v55 }
 0x583   : > { %1117 = vmatmul.msk.bf16.vlgmr.msrb.gmra.mxu2 %vm481_vm8, %v925_v62 }
 0x586   : > { %v802_v8 = vpop.f32.mrf.mxu2 }
 0x587   : > { %v806_v10 = vmul.f32 %v802_v8, %v782_v7 }
 0x589   : > { %v807_v12 = vpack.c.bf16 %v806_v10, %v805_v9 }
 0x58b   : > { %1114 = vmatmul.msk.bf16.vlgmr.msra.gmra.mxu0 %vm481_vm8, %v807_v12 }
 0x590   : > { %v687_v13 = vpop.f32.mrf.mxu0 }
 0x591   : > { %v708_v15 = vadd.f32 %v1700_v6, %v687_v13 }
 0x598   : > { %v689_v14 = vpop.f32.mrf.mxu0 }
 0x599   : > { %v710_v22 = vadd.f32 %v1702_v11, %v689_v14 }
 0x606   : > { %v941_v16 = vpop.f32.mrf.mxu2 }
 0x608   : > { %v823_v17 = vpop.f32.mrf.mxu0 }
 0x609   : > { %v828_v18 = vadd.f32 %v823_v17, %v708_v15 }
 0x60b   : > { %v946_v20 = vadd.f32 %v941_v16, %v828_v18 }
 0x60d   : > { %v951_v21 = vadd.f32 %v1224_v19, %v946_v20 }
 0x60e   : > { %v943_v24 = vpop.f32.mrf.mxu2 }
 0x60f   : > { %953 = vst.msk [vmem:[%s357_s9] sm:$0xff] %vm364_vm0, %v951_v21 }
 0x610   : > { %v825_v6 = vpop.f32.mrf.mxu0 }
 0x611   : > { %v829_v23 = vadd.f32 %v825_v6, %v710_v22 }
 0x613   : > { %v947_v25 = vadd.f32 %v943_v24, %v829_v23 }
 0x615   : > { %v952_v26 = vadd.f32 %v1224_v19, %v947_v25 }
 0x617   : > { %954 = vst.msk [vmem:[%s357_s9 + $0x8] sm:$0xff] %vm364_vm0, %v952_v26 }
 0x618   : > { %1410 = shalt.err (!%p1407_p12)
}
 0x619   : > { %s1478_s19 = smov 128   ;;  %s1479_s21 = smov 8  }
 0x61a   : > { %1141 = dma.vmem_to_hbm [thread:$0]  (%p1603_p7), %s969_s1, 256, %s971_s20, %s956_s28, %s1478_s19, %s1478_s19, %s1479_s21  }
 0x61b PF: > { %s985_s22 = sand.u32 1, %s1445_s24   ;;  %p1791_p13 = scmp.ge.s32.totalorder %s1457_s27, 2 }
 0x61c   : > { %s986_s23 = scalar_lea.sflag [#allocation4], %s985_s22 }
 0x61d   : > { %p1158_p0 = pnand %p1791_p13, %p1555_p6 }
 0x61f   : > { %p1159_p3 = pneg %p1158_p0 }
 0x621   : > { %1440 = dma.done.wait (%p1159_p3), %s986_s23, 256  }
 0x622   : > { %1442 = vsyncadd (%p1159_p3), %s986_s23, 4294967040  ;;  %p22_p5 = scmp.ge.s32.totalorder %s1589_s11, 4   ;;  %s1792_s24 = smov %s1449_s25 }
 0x623   : > { %s1793_s25 = smov %s1453_s26  ;;  %s1794_s26 = smov %s1599_s16 }
 0x624   : > { %s1795_s27 = smov %s1589_s11  ;;  %24 = sbr.rel (!%p22_p5) target bundleno = 9 (0x9), region = 108 }
 0x629   :  { %992 = vsyncpa [#allocation3], 1 }
 0x62a   :  { %994 = vsyncpa [#allocation3 + $0x1], 1 }
 0x62b   :  { %995 = vsyncpa [#allocation6], 1 }
 0x62c   :  { %996 = vsyncpa [#allocation9], 1 }
 0x62d   :  { %997 = vsyncpa [#allocation4], 1 }
 0x62e   :  { %999 = vsyncpa [#allocation4 + $0x1], 1 }

// kernel: tpu_custom_call.1
= control target key start
LH: loop header
LB: loop body
LE: loop exit
PB: predicated region body
PF: predicated region fallthrough
CT: control target
= control target key end

     0   :  { %s1775_s0 = inlined_call_operand.hbm [shape: f32[2,16,32], index: 0, kind: input, shape index: {}]   ;;  %s1776_s1 = inlined_call_operand.hbm [shape: f32[1,32], index: 1, kind: input, shape index: {}]   ;;  %s1777_s2 = inlined_call_operand.vmem [shape: f32[1,32], index: 2, kind: input, shape index: {}]   ;;  %s1778_s3 = inlined_call_operand.hbm [shape: bf16[32,96], index: 3, kind: input, shape index: {}]   ;;  %s1779_s4 = inlined_call_operand.hbm [shape: bf16[32,32], index: 4, kind: input, shape index: {}]   ;;  %s1780_s5 = inlined_call_operand.vmem [shape: f32[1,32], index: 5, kind: input, shape index: {}]   ;;  %s1781_s6 = inlined_call_operand.vmem [shape: f32[2,1,16], index: 6, kind: input, shape index: {}]   ;;  %s1782_s7 = inlined_call_operand.hbm [shape: f32[2,16,32], index: 7, kind: output, shape index: {}]  }
   0x1   :  { %1783 = sst [smem:[#allocation15_spill]] %s1776_s1 }
   0x2   :  { %12 = vsyncpa [#allocation3], 0 }
   0x3   :  { %14 = vsyncpa [#allocation3 + $0x1], 0 }
   0x4   :  { %15 = vsyncpa [#allocation6], 0 }
   0x5   :  { %16 = vsyncpa [#allocation9], 0 }
   0x6   :  { %17 = vsyncpa [#allocation4], 0 }
   0x7   :  { %19 = vsyncpa [#allocation4 + $0x1], 0  ;;  %s1520_s24 = smov 0   ;;  %s1522_s25 = smov 0  }
   0x8   :  { %s1524_s26 = smov 0   ;;  %s1526_s27 = smov 0  }
   0x9 LB: > { %s1541_s28 = sadd.s32 4294967295, %s1457_s27   ;;  %s1082_s29 = sadd.s32 4294967294, %s1457_s27   ;;  %s1457_s27 = sphi %s1526_s27, %s1795_s27   ;;  %s1453_s26 = sphi %s1524_s26, %s1794_s26   ;;  %s1449_s25 = sphi %s1522_s25, %s1793_s25   ;;  %s1445_s24 = sphi %s1520_s24, %s1792_s24  }
   0xa   : > { %p45_p0 = scmp.ne.s32.totalorder %s1449_s25, %s1445_s24  ;;  %p46_p1 = scmp.eq.s32.totalorder %s1541_s28, 0 }
   0xb   : > { %p200_p2 = scmp.eq.s32.totalorder %s1541_s28, 1  ;;  %p206_p3 = scmp.eq.s32.totalorder %s1082_s29, 1 }
   0xc   : > { %p1550_p4 = por %p46_p1, %p45_p0  ;;  %p1083_p5 = scmp.ge.s32.totalorder %s1457_s27, 1 }
   0xd   : > { %p1555_p6 = por %p206_p3, %p45_p0  ;;  %p213_p7 = scmp.lt.s32.totalorder %s1457_s27, 3 }
   0xe   : > { %s1786_s1 = sld [smem:[#allocation15_spill]]  ;;  %s1459_s13 = smov [#allocation5]  }
   0xf   : > { %p1563_p8 = pnand %p1083_p5, %p213_p7  ;;  %s227_s14 = sshll.u32 %s1459_s13, 4  ;;  %s228_s14 = int_to_ptr.vmem [resolvable:$true] %s227_s14 }
  0x10   : > { %s239_s17 = sshll.u32 %s1778_s3, 4  ;;  %s1460_s19 = smov [#allocation7]   ;;  %s240_s17 = int_to_ptr.hbm [resolvable:$true] %s239_s17 }
  0x11   : > { %p1143_p10 = pneg %p1563_p8  ;;  %s241_s20 = sshll.u32 %s1460_s19, 4  ;;  %s242_s20 = int_to_ptr.vmem [resolvable:$true] %s241_s20 }
  0x12   : > { %s1461_s21 = smov 64   ;;  %s1462_s22 = smov 4  }
  0x13   : > { %p1575_p11 = pnand %p1143_p10, %p46_p1  ;;  %s253_s9 = sshll.u32 %s1779_s4, 4  ;;  %s254_s9 = int_to_ptr.hbm [resolvable:$true] %s253_s9 }
  0x14   : > { %s225_s11 = sshll.u32 %s1786_s1, 4  ;;  %s1463_s10 = smov [#allocation8]   ;;  %s226_s11 = int_to_ptr.hbm [resolvable:$true] %s225_s11 }
  0x15   : > { %1146 = dma.hbm_to_vmem [thread:$0]  (!%p1575_p11), %s226_s11, 16, %s228_s14, [#allocation6]  }
  0x16   : > { %1149 = dma.hbm_to_vmem [thread:$0]  (!%p1575_p11), %s240_s17, 256, %s242_s20, [#allocation6], %s1461_s21, %s1461_s21, %s1462_s22  }
  0x17   : > { %s255_s13 = sshll.u32 %s1463_s10, 4  ;;  %s1589_s11 = sadd.s32 1, %s1457_s27   ;;  %s256_s13 = int_to_ptr.vmem [resolvable:$true] %s255_s13 }
  0x18   : > { %1152 = dma.hbm_to_vmem [thread:$0]  (!%p1575_p11), %s254_s9, 256, %s256_s13, [#allocation9], %s1461_s21, %s1461_s21, %s1462_s22  }
  0x19   : > { %s29_s14 = ssub.s32 %s1457_s27, %s1589_s11  ;;  %s32_s15 = sadd.s32 1, %s1453_s26 }
  0x1a   : > { %p30_p12 = scmp.eq.s32.totalorder %s29_s14, 0  ;;  %p39_p13 = scmp.ne.s32.totalorder %s1453_s26, %s1449_s25 }
  0x1b   : > { %p40_p0 = scmp.eq.s32.totalorder %s1457_s27, 0  ;;  %p1164_p3 = scmp.lt.s32.totalorder %s1457_s27, 2 }
  0x1c   : > { %s1599_s16 = scalar_select %p30_p12, %s1453_s26, %s32_s15  }
  0x1d   : > { %p41_p5 = por %p40_p0, %p39_p13  ;;  %p1603_p7 = por %p200_p2, %p39_p13 }
  0x1e   : > { %s272_s18 = sand.u32 1, %s1453_s26   ;;  %s1123_s19 = sshll.u32 %s1457_s27, 4 }
  0x1f   : > { %s1088_s20 = sshll.u32 %s272_s18, 4  ;;  %s281_s23 = scalar_lea.hbm %s1775_s0, %s1123_s19 }
  0x20   : > { %s282_s29 = sshll.u32 %s281_s23, 4  ;;  %s276_s9 = scalar_lea.vmem [#allocation2], %s1088_s20  ;;  %s283_s29 = int_to_ptr.hbm [resolvable:$true] %s282_s29 }
  0x21   : > { %s284_s10 = sshll.u32 %s276_s9, 4  ;;  %p1614_p10 = pnand %p1164_p3, %p41_p5  ;;  %s285_s10 = int_to_ptr.vmem [resolvable:$true] %s284_s10 }
  0x22   : > { %s273_s14 = scalar_lea.sflag [#allocation3], %s272_s18  ;;  %s1353_s15 = sshra.s32 %s283_s29, 4  ;;  %s1354_s15 = int_to_ptr.hbm [resolvable:$true] %s1353_s15 }
  0x23   : > { %s1355_s1 = scalar_lea.hbm %s1354_s15, 16  ;;  %p1357_p11 = pneg %p1614_p10 }
  0x24   : > { %p1356_p2 = scmp.ne.s32.totalorder %s1354_s15, %s1355_s1  ;;  %s1360_s21 = scalar_lea.hbm %s1775_s0, 32 }
  0x25   : > { %p1361_p0 = scmp.lt.s32.totalorder %s1354_s15, %s1775_s0  ;;  %p1362_p3 = scmp.lt.s32.totalorder %s1360_s21, %s1355_s1 }
  0x26   : > { %p1358_p12 = pnand %p1357_p11, %p1356_p2 }
  0x27   : > { %p1363_p5 = por %p1362_p3, %p1361_p0 }
  0x28   : > { %p1359_p13 = pneg %p1358_p12 }
  0x2a   : > { %p1364_p9 = pnand %p1363_p5, %p1359_p13 }
  0x2c   : > { %1367 = shalt.err (!%p1364_p9)
}
  0x2d   : > { %s1464_s18 = smov 128   ;;  %s1465_s9 = smov 8  }
  0x2e   : > { %1156 = dma.hbm_to_vmem [thread:$0]  (!%p1614_p10), %s283_s29, 256, %s285_s10, %s273_s14, %s1464_s18, %s1464_s18, %s1465_s9  }
  0x2f   : > { %302 = sbr.rel (%p1563_p8) target bundleno = 1563 (0x61b), region = 48  ;;  %s1631_s19 = sand.u32 (!%p1563_p8), 1, %s1449_s25  }
  0x30   : > { %s1092_s15 = sshll.u32 (!%p1563_p8), %s1631_s19, 4  ;;  %s305_s1 = scalar_lea.sflag (!%p1563_p8), [#allocation3], %s1631_s19 }
  0x31   : > { %s308_s20 = scalar_lea.vmem (!%p1563_p8), [#allocation2], %s1092_s15 }
  0x34   : > { %1428 = dma.done.wait (%p1550_p4), %s305_s1, 256  }
  0x35   : > { %1430 = vsyncadd (%p1550_p4), %s305_s1, 4294967040 }
  0x36   : > { %1432 = dma.done.wait (%p46_p1), [#allocation6], 272  }
  0x37   : > { %1434 = vsyncadd (%p46_p1), [#allocation6], 4294967024 }
  0x38   : > { %1436 = dma.done.wait (%p46_p1), [#allocation9], 256  }
  0x39   : > { %1438 = vsyncadd (%p46_p1), [#allocation9], 4294967040  ;;  %vm364_vm0 = vcmask 261120   ;;  %v362_v0 = vld [vmem:[%s308_s20] sm:$0xff]  ;;  %v363_v2 = vld [vmem:[%s308_s20 + $0x8] sm:$0xff]  ;;  %v1466_v4 = vmov 32.0  }
  0x3a   : > { %v365_v1 = vsel %vm364_vm0, %v362_v0, 0.0  ;;  %v368_v3 = vsel %vm364_vm0, %v363_v2, 0.0  ;;  %1225 = vrcp.f32 %v1466_v4  ;;  %v1125_v21 = vld [vmem:[#allocation7 + $0x8] sm:$0xff]  ;;  %v1124_v23 = vld [vmem:[#allocation7] sm:$0xff]  ;;  %v1222_v42 = vld [vmem:[#allocation5] ss:$0 sm:$0xff] }
  0x3b   : > { %366 = vadd.xlane.f32.xlu0 %v365_v1  ;;  %454 = vmatpush.bf16.msra.mxu0 %v1125_v21  ;;  %v1223_v47 = vld [vmem:[%s1777_s2] ss:$0 sm:$0xff]  ;;  %s1467_s29 = smov 64   ;;  %s1468_s10 = smov 96   ;;  %vm481_vm8 = vcmask 64512   ;;  %vm502_vm9 = vcmask 130048  }
  0x3c   : > { %s1469_s13 = smov 120   ;;  %s1470_s14 = smov 80   ;;  %vm674_vm10 = vcmask 1043456  }
  0x3d   : > { %s1471_s21 = smov 112   ;;  %p358_p1 = scmp.lt.s32.totalorder %s1541_s28, 1 }
  0x3e   : > { %s1472_s1 = smov 72   ;;  %s1473_s20 = smov 88  }
  0x3f   : > { %455 = vmatpush.bf16.msra.mxu0 %v1124_v23  ;;  %s359_s22 = scalar_select %p358_p1, %s1541_s28, 1 }
  0x40   : > { %v1226_v5 = vpop.eup %1225  ;;  %s1474_s30 = smov 56   ;;  %s1475_s12 = smov 104  }
  0x41   : > { %v372_v6 = vmul.f32 32.0, %v1226_v5  ;;  %vm376_vm1 = vweird.f32 %v1226_v5  ;;  %s360_s9 = scalar_lea.vmem %s1781_s6, %s359_s22 }
  0x42   : > { %v469_v62 = vld [vmem:[%s360_s9] sm:$0x1]  ;;  %s357_s9 = scalar_lea.vmem [#allocation10], %s1092_s15 }
  0x43   : > { %369 = vadd.xlane.f32.xlu0 %v368_v3  ;;  %v373_v7 = vsub.f32 1.0, %v372_v6  ;;  %v470_v63 = vmul.f32 -1e+30, %v469_v62 }
  0x45   : > { %v374_v8 = vmul.f32 %v1226_v5, %v373_v7  ;;  %v464_v7 = vld [vmem:[#allocation8] sm:$0xf] }
  0x47   : > { %v375_v9 = vadd.f32 %v1226_v5, %v374_v8  ;;  %v696_v8 = vsel %vm674_vm10, %v464_v7, 0 }
  0x49   : > { %v377_v10 = vsel %vm376_vm1, %v1226_v5, %v375_v9 }
  0xae   : > { %v367_v11 = vpop.xlane.xlu0 %366 }
  0xaf   : > { %v378_v12 = vmul.f32 %v377_v10, %v367_v11 }
  0xb1   : > { %v380_v13 = vsub.f32 %v362_v0, %v378_v12  ;;  %v1672_v0 = vperm.slane %v470_v63, 0 }
  0xb3   : > { %v382_v14 = vmul.f32 %v380_v13, %v380_v13 }
  0xb5   : > { %v384_v15 = vsel %vm364_vm0, %v382_v14, 0.0 }
  0xb6   : > { %385 = vadd.xlane.f32.xlu1 %v384_v15  ;;  %v370_v16 = vpop.xlane.xlu0 %369 }
  0xb7   : > { %v379_v17 = vmul.f32 %v377_v10, %v370_v16 }
  0xb9   : > { %v381_v18 = vsub.f32 %v363_v2, %v379_v17 }
  0xbb   : > { %v383_v19 = vmul.f32 %v381_v18, %v381_v18 }
  0xbd   : > { %v387_v20 = vsel %vm364_vm0, %v383_v19, 0.0 }
  0xbe   : > { %388 = vadd.xlane.f32.xlu1 %v387_v20 }
 0x129   : > { %v386_v22 = vpop.xlane.xlu1 %385 }
 0x12a   : > { %v390_v24 = vmul.f32 %v386_v22, %v377_v10 }
 0x12c   : > { %v392_v25 = vadd.f32 1e-05, %v390_v24 }
 0x12e   : > { %1227 = vrsqrt.f32 %v392_v25  ;;  %vm400_vm3 = vweird.f32 %v392_v25 }
 0x131   : > { %v389_v26 = vpop.xlane.xlu1 %388 }
 0x132   : > { %v391_v27 = vmul.f32 %v389_v26, %v377_v10 }
 0x134   : > { %v1228_v28 = vpop.eup %1227  ;;  %v393_v29 = vadd.f32 1e-05, %v391_v27 }
 0x135   : > { %v395_v30 = vmul.f32 %v1228_v28, %v392_v25  ;;  %vm401_vm2 = vweird.f32 %v1228_v28 }
 0x136   : > { %1229 = vrsqrt.f32 %v393_v29  ;;  %vm402_vm4 = vmor %vm400_vm3, %vm401_vm2  ;;  %vm410_vm6 = vweird.f32 %v393_v29 }
 0x137   : > { %v396_v31 = vmul.f32 %v1228_v28, %v395_v30 }
 0x139   : > { %v397_v32 = vmul.f32 0.5, %v396_v31 }
 0x13b   : > { %v398_v33 = vsub.f32 1.5, %v397_v32 }
 0x13c   : > { %v1230_v34 = vpop.eup %1229 }
 0x13d   : > { %v399_v35 = vmul.f32 %v1228_v28, %v398_v33  ;;  %v405_v36 = vmul.f32 %v1230_v34, %v393_v29  ;;  %vm411_vm5 = vweird.f32 %v1230_v34 }
 0x13e   : > { %vm412_vm7 = vmor %vm410_vm6, %vm411_vm5 }
 0x13f   : > { %v406_v37 = vmul.f32 %v1230_v34, %v405_v36  ;;  %v403_v38 = vsel %vm402_vm4, %v1228_v28, %v399_v35 }
 0x140   : > { %v414_v41 = vmul.f32 %v403_v38, %v380_v13 }
 0x141   : > { %v407_v39 = vmul.f32 0.5, %v406_v37 }
 0x142   : > { %v420_v46 = vmul.f32 %v1222_v42, %v414_v41 }
 0x143   : > { %v408_v40 = vsub.f32 1.5, %v407_v39 }
 0x144   : > { %v426_v49 = vadd.f32 %v1223_v47, %v420_v46 }
 0x145   : > { %v409_v43 = vmul.f32 %v1230_v34, %v408_v40 }
 0x147   : > { %v413_v44 = vsel %vm412_vm7, %v1230_v34, %v409_v43 }
 0x148   : > { %v415_v45 = vmul.f32 %v413_v44, %v381_v18 }
 0x14a   : > { %v421_v48 = vmul.f32 %v1222_v42, %v415_v45 }
 0x14c   : > { %v427_v50 = vadd.f32 %v1223_v47, %v421_v48 }
 0x14e   : > { %v428_v51 = vpack.c.bf16 %v427_v50, %v426_v49 }
 0x150   : > { %1105 = vmatmul.msk.bf16.vlgmr.msra.gmra.mxu0 %vm364_vm0, %v428_v51 }
 0x1cd   : > { %v457_v52 = vpop.f32.mrf.mxu0 }
 0x1ce   : > { %v462_v53 = vpack.c.bf16 %v457_v52, %v457_v52 }
 0x1d0   : > { %v476_v56 = vunpack.c.l.b16 %v462_v53 }
 0x1d5   : > { %v459_v54 = vpop.f32.mrf.mxu0 }
 0x1d6   : > { %v463_v55 = vpack.c.bf16 %v459_v54, %v459_v54 }
 0x1d8   : > { %v477_v57 = vunpack.c.l.b16 %v463_v55 }
 0x1da   : > { %v1657_v58 = vpack.c.b16 %v477_v57, %v476_v56 }
 0x1dc   : > { %552 = vrot.lane.b32.xlu1 %v1657_v58, %s1467_s29  ;;  %479 = vrot.lane.b32.xlu2 %v1657_v58, %s1468_s10  ;;  %s1476_s29 = smov 40   ;;  %s1477_s10 = smov 48  }
 0x1e4   : > { %575 = vrot.lane.b32.xlu1 %v1657_v58, %s1469_s13 }
 0x1ec   : > { %714 = vrot.lane.b32.xlu1 %v1657_v58, %s1470_s14 }
 0x1f4   : > { %712 = vrot.lane.b32.xlu1 %v1657_v58, %s1471_s21  ;;  %s1126_s21 = sshll.u32 %s1541_s28, 4  ;;  %s956_s28 = scalar_lea.sflag [#allocation4], %s1631_s19 }
 0x1f5   : > { %s967_s18 = scalar_lea.hbm %s1782_s7, %s1126_s21 }
 0x236   : > { %v480_v59 = vpop.permute.xlu2 %479 }
 0x237   : > { %v486_v60 = vsel %vm481_vm8, %v480_v59, 0 }
 0x238   : > { %495 = vmatpush.bf16.xpose.msra.mxu1 %v486_v60 }
 0x23f   : > { %1106 = vmatmul.msk.bf16.vlgmr.msra.gmra.mxu1 %vm481_vm8, %v1657_v58 }
 0x240   : > { %705 = vmatpush.bf16.msrb.mxu1 %v696_v8 }
 0x24e   : > { %v553_v61 = vpop.permute.xlu1 %552 }
 0x24f   : > { %565 = vmatpush.bf16.msra.mxu2 %v553_v61 }
 0x256   : > { %v576_v19 = vpop.permute.xlu1 %575 }
 0x25e   : > { %v715_v24 = vpop.permute.xlu1 %714 }
 0x25f   : > { %v720_v27 = vsel %vm481_vm8, %v715_v24, 0 }
 0x266   : > { %v713_v28 = vpop.permute.xlu1 %712 }
 0x2bc   : > { %v497_v1 = vpop.f32.mrf.mxu1 }
 0x2bd   : > { %v498_v2 = vadd.f32 %v497_v1, %v1672_v0 }
 0x2bf   : > { %v503_v3 = vsel %vm502_vm9, %v498_v2, -inf }
 0x2c0   : > { %504 = vmax.xlane.f32.xlu2 %v503_v3 }
 0x2c4   : > { %v499_v4 = vpop.f32.mrf.mxu1 }
 0x2c5   : > { %v500_v5 = vadd.f32 %v499_v4, %v1672_v0 }
 0x2c7   : > { %v506_v6 = vsel %vm502_vm9, %v500_v5, -inf }
 0x2c8   : > { %507 = vmax.xlane.f32.xlu0 %v506_v6 }
 0x2d8   : > { %832 = vrot.lane.b32.xlu2 %v1657_v58, %s1472_s1  ;;  %s968_s1 = sshll.u32 %s357_s9, 4  ;;  %s969_s1 = int_to_ptr.vmem [resolvable:$true] %s968_s1 }
 0x2dc   : > { %577 = vrot.lane.b32.xlu0 %v1657_v58, %s1473_s20  ;;  %s970_s20 = sshll.u32 %s967_s18, 4  ;;  %s971_s20 = int_to_ptr.hbm [resolvable:$true] %s970_s20 }
 0x2e0   : > { %648 = vrot.lane.b32.xlu2 %v1657_v58, %s1474_s30  ;;  %s1397_s30 = sshra.s32 %s971_s20, 4  ;;  %s1398_s30 = int_to_ptr.hbm [resolvable:$true] %s1397_s30 }
 0x2e1   : > { %p1404_p10 = scmp.lt.s32.totalorder %s1398_s30, %s1782_s7 }
 0x333   : > { %v505_v9 = vpop.xlane.xlu2 %504 }
 0x334   : > { %v509_v10 = vsub.f32 %v498_v2, %v505_v9 }
 0x336   : > { %v511_v11 = vmul.f32 1.442695, %v509_v10 }
 0x338   : > { %1231 = vpow2.f32 %v511_v11 }
 0x33b   : > { %v508_v12 = vpop.xlane.xlu0 %507  ;;  %v833_v13 = vpop.permute.xlu2 %832 }
 0x33c   : > { %v510_v14 = vsub.f32 %v500_v5, %v508_v12  ;;  %v838_v15 = vsel %vm481_vm8, %v833_v13, 0 }
 0x33d   : > { %847 = vmatpush.bf16.xpose.msra.mxu1 %v838_v15 }
 0x33e   : > { %v1232_v16 = vpop.eup %1231  ;;  %v513_v17 = vmul.f32 1.442695, %v510_v14 }
 0x33f   : > { %v515_v18 = vsel %vm502_vm9, %v1232_v16, 0.0 }
 0x340   : > { %1233 = vpow2.f32 %v513_v17  ;;  %516 = vadd.xlane.f32.xlu0 %v515_v18 }
 0x343   : > { %v649_v20 = vpop.permute.xlu2 %648 }
 0x344   : > { %661 = vmatpush.bf16.msrb.mxu2 %v649_v20 }
 0x346   : > { %v1234_v21 = vpop.eup %1233 }
 0x347   : > { %v518_v22 = vsel %vm502_vm9, %v1234_v21, 0.0  ;;  %v551_v23 = vpack.c.bf16 %v1234_v21, %v1232_v16 }
 0x348   : > { %519 = vadd.xlane.f32.xlu0 %v518_v22 }
 0x349   : > { %1107 = vmatmul.msk.bf16.vlgmr.msra.gmra.mxu2 %vm502_vm9, %v551_v23 }
 0x34e   : > { %v578_v25 = vpop.permute.xlu0 %577 }
 0x34f   : > { %v583_v26 = vsel %vm481_vm8, %v578_v25, 0 }
 0x350   : > { %592 = vmatpush.bf16.xpose.msra.mxu3 %v583_v26 }
 0x357   : > { %1108 = vmatmul.msk.bf16.vlgmr.msra.gmra.mxu3 %vm481_vm8, %v576_v19 }
 0x358   : > { %729 = vmatpush.bf16.xpose.msrb.mxu3 %v720_v27 }
 0x35c   : > { %830 = vrot.lane.b32.xlu0 %v1657_v58, %s1475_s12  ;;  %s1399_s12 = scalar_lea.hbm %s1398_s30, 16 }
 0x35d   : > { %p1400_p4 = scmp.ne.s32.totalorder %s1398_s30, %s1399_s12 }
 0x35f   : > { %p1401_p8 = pnand %p1400_p4, %p1603_p7 }
 0x361   : > { %p1402_p9 = pneg %p1401_p8 }
 0x367   : > { %1112 = vmatmul.msk.bf16.vlgmr.msrb.gmra.mxu3 %vm481_vm8, %v713_v28 }
 0x3b3   : > { %v517_v29 = vpop.xlane.xlu0 %516 }
 0x3b4   : > { %1235 = vrcp.f32 %v517_v29  ;;  %vm526_vm13 = vweird.f32 %v517_v29  ;;  %v532_v42 = vand.u32 2147483648, %v517_v29  ;;  %v530_v44 = vand.u32 2147483647, %v517_v29 }
 0x3b6   : > { %v533_v48 = vor.u32 1.1754944e-38, %v532_v42  ;;  %vm531_vm2 = vcmp.eq.f32.partialorder %v530_v44, 8.507059e+37 }
 0x3ba   : > { %v1236_v31 = vpop.eup %1235 }
 0x3bb   : > { %v520_v30 = vpop.xlane.xlu0 %519  ;;  %v522_v32 = vmul.f32 %v1236_v31, %v517_v29  ;;  %vm527_vm11 = vweird.f32 %v1236_v31 }
 0x3bc   : > { %1237 = vrcp.f32 %v520_v30  ;;  %v547_v43 = vand.u32 2147483648, %v520_v30  ;;  %vm528_vm14 = vmor %vm526_vm13, %vm527_vm11  ;;  %vm541_vm15 = vweird.f32 %v520_v30  ;;  %v545_v45 = vand.u32 2147483647, %v520_v30 }
 0x3bd   : > { %v523_v35 = vsub.f32 1.0, %v522_v32 }
 0x3be   : > { %v548_v49 = vor.u32 1.1754944e-38, %v547_v43  ;;  %vm546_vm3 = vcmp.eq.f32.partialorder %v545_v45, 8.507059e+37 }
 0x3bf   : > { %v524_v37 = vmul.f32 %v1236_v31, %v523_v35 }
 0x3c1   : > { %v525_v40 = vadd.f32 %v1236_v31, %v524_v37 }
 0x3c2   : > { %v1238_v33 = vpop.eup %1237 }
 0x3c3   : > { %v537_v34 = vmul.f32 %v1238_v33, %v520_v30  ;;  %vm542_vm12 = vweird.f32 %v1238_v33  ;;  %v529_v46 = vsel %vm528_vm14, %v1236_v31, %v525_v40  ;;  %v465_v40 = vld [vmem:[#allocation8 + $0x4] sm:$0xf] }
 0x3c4   : > { %vm543_vm1 = vmor %vm541_vm15, %vm542_vm12  ;;  %v534_v50 = vsel %vm531_vm2, %v533_v48, %v529_v46  ;;  %v676_v42 = vsel %vm674_vm10, %v465_v40, 0 }
 0x3c5   : > { %v538_v36 = vsub.f32 1.0, %v537_v34  ;;  %685 = vmatpush.bf16.msrb.mxu0 %v676_v42 }
 0x3c7   : > { %v539_v38 = vmul.f32 %v1238_v33, %v538_v36 }
 0x3c9   : > { %v540_v41 = vadd.f32 %v1238_v33, %v539_v38 }
 0x3cb   : > { %v544_v47 = vsel %vm543_vm1, %v1238_v33, %v540_v41 }
 0x3cc   : > { %v567_v39 = vpop.f32.mrf.mxu2  ;;  %v549_v51 = vsel %vm546_vm3, %v548_v49, %v544_v47 }
 0x3cd   : > { %v572_v53 = vmul.f32 %v567_v39, %v534_v50 }
 0x3ce   : > { %v831_v63 = vpop.permute.xlu0 %830 }
 0x3d4   : > { %v569_v52 = vpop.f32.mrf.mxu2 }
 0x3d5   : > { %v573_v54 = vmul.f32 %v569_v52, %v549_v51 }
 0x3d7   : > { %v574_v55 = vpack.c.bf16 %v573_v54, %v572_v53 }
 0x3d9   : > { %1111 = vmatmul.msk.bf16.vlgmr.msrb.gmra.mxu1 %vm481_vm8, %v574_v55 }
 0x3da   : > { %v594_v56 = vpop.f32.mrf.mxu3 }
 0x3db   : > { %v595_v57 = vadd.f32 %v594_v56, %v1672_v0 }
 0x3dd   : > { %v599_v59 = vsel %vm502_vm9, %v595_v57, -inf }
 0x3de   : > { %600 = vmax.xlane.f32.xlu1 %v599_v59 }
 0x3e2   : > { %v596_v60 = vpop.f32.mrf.mxu3 }
 0x3e3   : > { %v597_v61 = vadd.f32 %v596_v60, %v1672_v0 }
 0x3e5   : > { %v602_v62 = vsel %vm502_vm9, %v597_v61, -inf }
 0x3e6   : > { %603 = vmax.xlane.f32.xlu0 %v602_v62 }
 0x3e9   : > { %1115 = vmatmul.msk.bf16.vlgmr.msra.gmra.mxu1 %vm481_vm8, %v831_v63 }
 0x3ea   : > { %v731_v1 = vpop.f32.mrf.mxu3 }
 0x3eb   : > { %v732_v2 = vadd.f32 %v731_v1, %v1672_v0 }
 0x3ed   : > { %v736_v3 = vsel %vm502_vm9, %v732_v2, -inf }
 0x3ee   : > { %737 = vmax.xlane.f32.xlu0 %v736_v3 }
 0x3f2   : > { %v733_v22 = vpop.f32.mrf.mxu3 }
 0x3f3   : > { %v734_v24 = vadd.f32 %v733_v22, %v1672_v0 }
 0x3f5   : > { %v739_v25 = vsel %vm502_vm9, %v734_v24, -inf }
 0x402   : > { %903 = vrot.lane.b32.xlu0 %v1657_v58, %s1476_s29 }
 0x451   : > { %v601_v4 = vpop.xlane.xlu1 %600 }
 0x452   : > { %v605_v5 = vsub.f32 %v595_v57, %v601_v4 }
 0x454   : > { %v607_v7 = vmul.f32 1.442695, %v605_v5 }
 0x456   : > { %v1700_v6 = vpop.f32.mrf.mxu1  ;;  %1239 = vpow2.f32 %v607_v7 }
 0x459   : > { %v604_v8 = vpop.xlane.xlu0 %603 }
 0x45a   : > { %v606_v9 = vsub.f32 %v597_v61, %v604_v8 }
 0x45c   : > { %v609_v10 = vmul.f32 1.442695, %v606_v9  ;;  %v1240_v12 = vpop.eup %1239 }
 0x45d   : > { %v611_v26 = vsel %vm502_vm9, %v1240_v12, 0.0 }
 0x45e   : > { %1241 = vpow2.f32 %v609_v10  ;;  %v1702_v11 = vpop.f32.mrf.mxu1 }
 0x461   : > { %v738_v18 = vpop.xlane.xlu0 %737 }
 0x462   : > { %v742_v28 = vsub.f32 %v732_v2, %v738_v18  ;;  %v466_v18 = vld [vmem:[#allocation8 + $0x8] sm:$0xf] }
 0x464   : > { %v1242_v13 = vpop.eup %1241  ;;  %v744_v29 = vmul.f32 1.442695, %v742_v28 }
 0x465   : > { %v647_v14 = vpack.c.bf16 %v1242_v13, %v1240_v12  ;;  %v614_v27 = vsel %vm502_vm9, %v1242_v13, 0.0 }
 0x466   : > { %v849_v15 = vpop.f32.mrf.mxu1  ;;  %1243 = vpow2.f32 %v744_v29 }
 0x467   : > { %v850_v16 = vadd.f32 %v849_v15, %v1672_v0  ;;  %1109 = vmatmul.msk.bf16.vlgmr.msrb.gmra.mxu2 %vm502_vm9, %v647_v14 }
 0x469   : > { %v854_v17 = vsel %vm502_vm9, %v850_v16, -inf }
 0x46a   : > { %855 = vmax.xlane.f32.xlu2 %v854_v17  ;;  %v467_v17 = vld [vmem:[#allocation8 + $0xc] sm:$0xf] }
 0x46c   : > { %v1244_v30 = vpop.eup %1243 }
 0x46d   : > { %v748_v31 = vsel %vm502_vm9, %v1244_v30, 0.0 }
 0x46e   : > { %v851_v19 = vpop.f32.mrf.mxu1 }
 0x46f   : > { %v852_v20 = vadd.f32 %v851_v19, %v1672_v0  ;;  %v930_v19 = vsel %vm674_vm10, %v467_v17, 0 }
 0x471   : > { %v857_v21 = vsel %vm502_vm9, %v852_v20, -inf }
 0x472   : > { %858 = vmax.xlane.f32.xlu1 %v857_v21 }
 0x474   : > { %v904_v23 = vpop.permute.xlu0 %903 }
 0x475   : > { %916 = vmatpush.bf16.msra.mxu3 %v904_v23 }
 0x47a   : > { %740 = vmax.xlane.f32.xlu1 %v739_v25 }
 0x482   : > { %612 = vadd.xlane.f32.xlu1 %v611_v26  ;;  %785 = vrot.lane.b32.xlu2 %v1657_v58, %s1477_s10  ;;  %s1403_s10 = scalar_lea.hbm %s1782_s7, 32 }
 0x483   : > { %p1405_p2 = scmp.lt.s32.totalorder %s1403_s10, %s1399_s12 }
 0x485   : > { %p1406_p11 = por %p1405_p2, %p1404_p10 }
 0x487   : > { %p1407_p12 = pnand %p1406_p11, %p1402_p9 }
 0x48a   : > { %615 = vadd.xlane.f32.xlu1 %v614_v27 }
 0x4ab   : > { %749 = vadd.xlane.f32.xlu2 %v748_v31 }
 0x4dd   : > { %v856_v0 = vpop.xlane.xlu2 %855 }
 0x4de   : > { %v860_v32 = vsub.f32 %v850_v16, %v856_v0 }
 0x4e0   : > { %v862_v33 = vmul.f32 1.442695, %v860_v32 }
 0x4e2   : > { %1245 = vpow2.f32 %v862_v33 }
 0x4e5   : > { %v859_v34 = vpop.xlane.xlu1 %858  ;;  %v786_v35 = vpop.permute.xlu2 %785 }
 0x4e6   : > { %v861_v36 = vsub.f32 %v852_v20, %v859_v34  ;;  %798 = vmatpush.bf16.msra.mxu2 %v786_v35  ;;  %v812_v20 = vsel %vm674_vm10, %v466_v18, 0 }
 0x4e7   : > { %821 = vmatpush.bf16.msra.mxu0 %v812_v20 }
 0x4e8   : > { %v1246_v37 = vpop.eup %1245  ;;  %v864_v58 = vmul.f32 1.442695, %v861_v36 }
 0x4e9   : > { %v866_v38 = vsel %vm502_vm9, %v1246_v37, 0.0 }
 0x4ea   : > { %1247 = vpow2.f32 %v864_v58  ;;  %867 = vadd.xlane.f32.xlu0 %v866_v38  ;;  %v663_v57 = vpop.f32.mrf.mxu2  ;;  %939 = vmatpush.bf16.msrb.mxu2 %v930_v19  ;;  %v1224_v19 = vld [vmem:[%s1780_s5] ss:$0 sm:$0xff] }
 0x4ed   : > { %v741_v39 = vpop.xlane.xlu1 %740 }
 0x4ee   : > { %v743_v41 = vsub.f32 %v734_v24, %v741_v39 }
 0x4f0   : > { %v1248_v43 = vpop.eup %1247  ;;  %v746_v44 = vmul.f32 1.442695, %v743_v41 }
 0x4f1   : > { %v902_v45 = vpack.c.bf16 %v1248_v43, %v1246_v37  ;;  %v869_v46 = vsel %vm502_vm9, %v1248_v43, 0.0 }
 0x4f2   : > { %1249 = vpow2.f32 %v746_v44  ;;  %870 = vadd.xlane.f32.xlu1 %v869_v46  ;;  %v665_v12 = vpop.f32.mrf.mxu2 }
 0x4f3   : > { %1116 = vmatmul.msk.bf16.vlgmr.msra.gmra.mxu3 %vm502_vm9, %v902_v45 }
 0x4f5   : > { %v613_v47 = vpop.xlane.xlu1 %612 }
 0x4f6   : > { %1251 = vrcp.f32 %v613_v47  ;;  %v628_v61 = vand.u32 2147483648, %v613_v47  ;;  %vm622_vm5 = vweird.f32 %v613_v47  ;;  %v626_v62 = vand.u32 2147483647, %v613_v47 }
 0x4f8   : > { %v1250_v48 = vpop.eup %1249  ;;  %v629_v5 = vor.u32 1.1754944e-38, %v628_v61 }
 0x4f9   : > { %v784_v49 = vpack.c.bf16 %v1250_v48, %v1244_v30  ;;  %v751_v50 = vsel %vm502_vm9, %v1250_v48, 0.0 }
 0x4fa   : > { %752 = vadd.xlane.f32.xlu1 %v751_v50 }
 0x4fb   : > { %1113 = vmatmul.msk.bf16.vlgmr.msra.gmra.mxu2 %vm502_vm9, %v784_v49  ;;  %vm627_vm9 = vcmp.eq.f32.partialorder %v626_v62, 8.507059e+37 }
 0x4fc   : > { %v1252_v51 = vpop.eup %1251 }
 0x4fd   : > { %v618_v52 = vmul.f32 %v1252_v51, %v613_v47  ;;  %v616_v53 = vpop.xlane.xlu1 %615  ;;  %vm623_vm4 = vweird.f32 %v1252_v51 }
 0x4fe   : > { %1253 = vrcp.f32 %v616_v53  ;;  %vm624_vm6 = vmor %vm622_vm5, %vm623_vm4  ;;  %v643_v1 = vand.u32 2147483648, %v616_v53  ;;  %v641_v4 = vand.u32 2147483647, %v616_v53  ;;  %vm637_vm11 = vweird.f32 %v616_v53 }
 0x4ff   : > { %v619_v54 = vsub.f32 1.0, %v618_v52 }
 0x500   : > { %v644_v8 = vor.u32 1.1754944e-38, %v643_v1  ;;  %vm642_vm13 = vcmp.eq.f32.partialorder %v641_v4, 8.507059e+37 }
 0x501   : > { %v620_v55 = vmul.f32 %v1252_v51, %v619_v54 }
 0x503   : > { %v621_v59 = vadd.f32 %v1252_v51, %v620_v55 }
 0x504   : > { %v1254_v56 = vpop.eup %1253 }
 0x505   : > { %v633_v60 = vmul.f32 %v1254_v56, %v616_v53  ;;  %v625_v2 = vsel %vm624_vm6, %v1252_v51, %v621_v59  ;;  %vm638_vm7 = vweird.f32 %v1254_v56 }
 0x506   : > { %vm639_vm12 = vmor %vm637_vm11, %vm638_vm7  ;;  %v630_v9 = vsel %vm627_vm9, %v629_v5, %v625_v2 }
 0x507   : > { %v634_v63 = vsub.f32 1.0, %v633_v60  ;;  %v668_v14 = vmul.f32 %v663_v57, %v630_v9 }
 0x509   : > { %v635_v3 = vmul.f32 %v1254_v56, %v634_v63 }
 0x50b   : > { %v636_v7 = vadd.f32 %v1254_v56, %v635_v3 }
 0x50d   : > { %v640_v10 = vsel %vm639_vm12, %v1254_v56, %v636_v7 }
 0x50e   : > { %v645_v13 = vsel %vm642_vm13, %v644_v8, %v640_v10 }
 0x50f   : > { %v669_v15 = vmul.f32 %v665_v12, %v645_v13 }
 0x511   : > { %v670_v16 = vpack.c.bf16 %v669_v15, %v668_v14 }
 0x513   : > { %1110 = vmatmul.msk.bf16.vlgmr.msrb.gmra.mxu0 %vm481_vm8, %v670_v16 }
 0x51e   : > { %v1724_v23 = vpop.xlane.xlu2 %749 }
 0x51f   : > { %vm759_vm9 = vweird.f32 %v1724_v23  ;;  %v765_v59 = vand.u32 2147483648, %v1724_v23  ;;  %v763_v61 = vand.u32 2147483647, %v1724_v23 }
 0x521   : > { %v766_v3 = vor.u32 1.1754944e-38, %v765_v59 }
 0x55d   : > { %v868_v21 = vpop.xlane.xlu0 %867 }
 0x55e   : > { %1255 = vrcp.f32 %v868_v21  ;;  %vm877_vm15 = vweird.f32 %v868_v21  ;;  %v883_v40 = vand.u32 2147483648, %v868_v21  ;;  %v881_v42 = vand.u32 2147483647, %v868_v21 }
 0x560   : > { %v884_v48 = vor.u32 1.1754944e-38, %v883_v40  ;;  %vm882_vm4 = vcmp.eq.f32.partialorder %v881_v42, 8.507059e+37 }
 0x564   : > { %v1256_v24 = vpop.eup %1255 }
 0x565   : > { %v871_v22 = vpop.xlane.xlu1 %870  ;;  %v873_v25 = vmul.f32 %v1256_v24, %v868_v21  ;;  %vm878_vm10 = vweird.f32 %v1256_v24 }
 0x566   : > { %1257 = vrcp.f32 %v871_v22  ;;  %v898_v41 = vand.u32 2147483648, %v871_v22  ;;  %vm879_vm1 = vmor %vm877_vm15, %vm878_vm10  ;;  %vm892_vm2 = vweird.f32 %v871_v22  ;;  %v896_v43 = vand.u32 2147483647, %v871_v22 }
 0x567   : > { %1259 = vrcp.f32 %v1724_v23  ;;  %v874_v30 = vsub.f32 1.0, %v873_v25  ;;  %vm764_vm10 = vcmp.eq.f32.partialorder %v763_v61, 8.507059e+37 }
 0x568   : > { %v899_v49 = vor.u32 1.1754944e-38, %v898_v41  ;;  %vm897_vm5 = vcmp.eq.f32.partialorder %v896_v43, 8.507059e+37 }
 0x569   : > { %v875_v32 = vmul.f32 %v1256_v24, %v874_v30 }
 0x56b   : > { %v876_v38 = vadd.f32 %v1256_v24, %v875_v32 }
 0x56c   : > { %v1258_v26 = vpop.eup %1257 }
 0x56d   : > { %v888_v27 = vmul.f32 %v1258_v26, %v871_v22  ;;  %v753_v28 = vpop.xlane.xlu1 %752  ;;  %v1260_v29 = vpop.eup %1259  ;;  %vm893_vm14 = vweird.f32 %v1258_v26  ;;  %v880_v46 = vsel %vm879_vm1, %v1256_v24, %v876_v38 }
 0x56e   : > { %1261 = vrcp.f32 %v753_v28  ;;  %v755_v0 = vmul.f32 %v1260_v29, %v1724_v23  ;;  %vm894_vm3 = vmor %vm892_vm2, %vm893_vm14  ;;  %v885_v50 = vsel %vm882_vm4, %v884_v48, %v880_v46  ;;  %vm760_vm6 = vweird.f32 %v1260_v29 }
 0x56f   : > { %v889_v31 = vsub.f32 1.0, %v888_v27  ;;  %v780_v60 = vand.u32 2147483648, %v753_v28  ;;  %vm774_vm11 = vweird.f32 %v753_v28  ;;  %vm761_vm12 = vmor %vm759_vm9, %vm760_vm6  ;;  %v778_v63 = vand.u32 2147483647, %v753_v28 }
 0x570   : > { %v756_v36 = vsub.f32 1.0, %v755_v0 }
 0x571   : > { %v890_v33 = vmul.f32 %v1258_v26, %v889_v31  ;;  %v781_v4 = vor.u32 1.1754944e-38, %v780_v60  ;;  %vm779_vm14 = vcmp.eq.f32.partialorder %v778_v63, 8.507059e+37 }
 0x572   : > { %v757_v44 = vmul.f32 %v1260_v29, %v756_v36 }
 0x573   : > { %v891_v39 = vadd.f32 %v1258_v26, %v890_v33 }
 0x574   : > { %v1262_v34 = vpop.eup %1261  ;;  %v758_v51 = vadd.f32 %v1260_v29, %v757_v44 }
 0x575   : > { %v770_v35 = vmul.f32 %v1262_v34, %v753_v28  ;;  %v895_v47 = vsel %vm894_vm3, %v1258_v26, %v891_v39  ;;  %vm775_vm7 = vweird.f32 %v1262_v34 }
 0x576   : > { %v918_v37 = vpop.f32.mrf.mxu3  ;;  %v900_v53 = vsel %vm897_vm5, %v899_v49, %v895_v47  ;;  %vm776_vm13 = vmor %vm774_vm11, %vm775_vm7  ;;  %v762_v1 = vsel %vm761_vm12, %v1260_v29, %v758_v51 }
 0x577   : > { %v771_v58 = vsub.f32 1.0, %v770_v35  ;;  %v923_v55 = vmul.f32 %v918_v37, %v885_v50  ;;  %v767_v5 = vsel %vm764_vm10, %v766_v3, %v762_v1 }
 0x579   : > { %v772_v45 = vmul.f32 %v1262_v34, %v771_v58 }
 0x57b   : > { %v773_v57 = vadd.f32 %v1262_v34, %v772_v45 }
 0x57d   : > { %v777_v2 = vsel %vm776_vm13, %v1262_v34, %v773_v57 }
 0x57e   : > { %v800_v52 = vpop.f32.mrf.mxu2  ;;  %v920_v54 = vpop.f32.mrf.mxu3  ;;  %v782_v7 = vsel %vm779_vm14, %v781_v4, %v777_v2 }
 0x57f   : > { %v924_v56 = vmul.f32 %v920_v54, %v900_v53  ;;  %v805_v9 = vmul.f32 %v800_v52, %v767_v5 }
 0x581   : > { %v925_v62 = vpack.c.bf16 %v924_v56, %v923_v55 }
 0x583   : > { %1117 = vmatmul.msk.bf16.vlgmr.msrb.gmra.mxu2 %vm481_vm8, %v925_v62 }
 0x586   : > { %v802_v8 = vpop.f32.mrf.mxu2 }
 0x587   : > { %v806_v10 = vmul.f32 %v802_v8, %v782_v7 }
 0x589   : > { %v807_v12 = vpack.c.bf16 %v806_v10, %v805_v9 }
 0x58b   : > { %1114 = vmatmul.msk.bf16.vlgmr.msra.gmra.mxu0 %vm481_vm8, %v807_v12 }
 0x590   : > { %v687_v13 = vpop.f32.mrf.mxu0 }
 0x591   : > { %v708_v15 = vadd.f32 %v1700_v6, %v687_v13 }
 0x598   : > { %v689_v14 = vpop.f32.mrf.mxu0 }
 0x599   : > { %v710_v22 = vadd.f32 %v1702_v11, %v689_v14 }
 0x606   : > { %v941_v16 = vpop.f32.mrf.mxu2 }
 0x608   : > { %v823_v17 = vpop.f32.mrf.mxu0 }
 0x609   : > { %v828_v18 = vadd.f32 %v823_v17, %v708_v15 }
 0x60b   : > { %v946_v20 = vadd.f32 %v941_v16, %v828_v18 }
 0x60d   : > { %v951_v21 = vadd.f32 %v1224_v19, %v946_v20 }
 0x60e   : > { %v943_v24 = vpop.f32.mrf.mxu2 }
 0x60f   : > { %953 = vst.msk [vmem:[%s357_s9] sm:$0xff] %vm364_vm0, %v951_v21 }
 0x610   : > { %v825_v6 = vpop.f32.mrf.mxu0 }
 0x611   : > { %v829_v23 = vadd.f32 %v825_v6, %v710_v22 }
 0x613   : > { %v947_v25 = vadd.f32 %v943_v24, %v829_v23 }
 0x615   : > { %v952_v26 = vadd.f32 %v1224_v19, %v947_v25 }
 0x617   : > { %954 = vst.msk [vmem:[%s357_s9 + $0x8] sm:$0xff] %vm364_vm0, %v952_v26 }
 0x618   : > { %1410 = shalt.err (!%p1407_p12)
}
 0x619   : > { %s1478_s19 = smov 128   ;;  %s1479_s21 = smov 8  }
 0x61a   : > { %1141 = dma.vmem_to_hbm [thread:$0]  (%p1603_p7), %s969_s1, 256, %s971_s20, %s956_s28, %s1478_s19, %s1478_s19, %s1479_s21  }
 0x61b PF: > { %s985_s22 = sand.u32 1, %s1445_s24   ;;  %p1791_p13 = scmp.ge.s32.totalorder %s1457_s27, 2 }
 0x61c   : > { %s986_s23 = scalar_lea.sflag [#allocation4], %s985_s22 }
 0x61d   : > { %p1158_p0 = pnand %p1791_p13, %p1555_p6 }
 0x61f   : > { %p1159_p3 = pneg %p1158_p0 }
 0x621   : > { %1440 = dma.done.wait (%p1159_p3), %s986_s23, 256  }
 0x622   : > { %1442 = vsyncadd (%p1159_p3), %s986_s23, 4294967040  ;;  %p22_p5 = scmp.ge.s32.totalorder %s1589_s11, 4   ;;  %s1792_s24 = smov %s1449_s25 }
 0x623   : > { %s1793_s25 = smov %s1453_s26  ;;  %s1794_s26 = smov %s1599_s16 }
 0x624   : > { %s1795_s27 = smov %s1589_s11  ;;  %24 = sbr.rel (!%p22_p5) target bundleno = 9 (0x9), region = 108 }
 0x629   :  { %992 = vsyncpa [#allocation3], 1 }
 0x62a   :  { %994 = vsyncpa [#allocation3 + $0x1], 1 }
 0x62b   :  { %995 = vsyncpa [#allocation6], 1 }
 0x62c   :  { %996 = vsyncpa [#allocation9], 1 }
 0x62d   :  { %997 = vsyncpa [#allocation4], 1 }
 0x62e   :  { %999 = vsyncpa [#allocation4 + $0x1], 1 }

</bundles_post_ra>
